<compile_context>
chip_gen: v6e
topology: v6e:2x2x1
jax: 0.10.0
libtpu: 0.0.40
codegen_flags: <defaults>
</compile_context>

<pallas_src>
import math

import jax
import jax.numpy as jnp
from jax.experimental import pallas as pl
from jax.experimental.pallas import tpu as pltpu

# ----------------------------- small config ---------------------------------
B = 2                 # batch
S = 16                # sequence length
N_CODEBOOKS = 4
VOCAB = 32            # vocab_size (small)
LATENT = 8            # latent_dim
D_MODEL = 64
N_HEADS = 4
N_LAYERS = 2
D_HEAD = D_MODEL // N_HEADS
FFN_DIM = 2 * D_MODEL            # GatedGELU default ffn_dim = d_model * 2
MASK_TOKEN = VOCAB               # mask token id == vocab_size
REL_BUCKETS = 32
REL_MAX_DIST = 128
RMS_EPS = 1e-6
LOGIT_DIM = N_CODEBOOKS * (VOCAB + 1)     # 132
LOGIT_PAD = 256                           # lane-dense output width
SQRT_2_OVER_PI = math.sqrt(2.0 / math.pi)
NEG_INF = -1e9

# rows of the packed "small parameters" buffer (N_LAYERS, N_SMALL_ROWS, 256)
ROW_NORM1, ROW_NORM3, ROW_FILM_B, ROW_FFN_B1, ROW_FFN_B2 = 0, 1, 2, 3, 4
ROW_EMB_B, ROW_FINAL, ROW_OUT_B = 5, 6, 7
N_SMALL_ROWS = 8
SMALL_W = 256


# ------------------------- the single fused kernel ---------------------------

def _vampnet_fused_kernel(latents_ref, emb_w_ref, bias_ref,
                          wqkv_ref, wo_ref, film_w_ref,
                          ffn_w1_ref, ffn_w2_ref, out_w_ref, sm_ref,
                          logits_ref, x_scr):
    """Grid = (batch_block, layer). x carried across the layer axis in x_scr."""
    l = pl.program_id(1)

    def mm(a, b):
        # bf16 MXU operands, f32 accumulate.
        return jnp.dot(a.astype(jnp.bfloat16), b.astype(jnp.bfloat16),
                       preferred_element_type=jnp.float32)

    def rmsnorm(x, w):
        var = jnp.mean(x * x, axis=-1, keepdims=True)
        return x * jax.lax.rsqrt(var + RMS_EPS) * w

    sm = sm_ref[0]                                   # (N_SMALL_ROWS, 256) f32

    # ---- layer 0 only: embedding projection (1x1 conv over latents) ----
    @pl.when(l == 0)
    def _():
        x_scr[...] = (mm(latents_ref[0], emb_w_ref[...])
                      + sm[ROW_EMB_B:ROW_EMB_B + 1, :D_MODEL])

    x = x_scr[...]                                               # (S, D)

    # ---------- self attention (T5-style: unscaled, bias-free proj) ----------
    xn = rmsnorm(x, sm[ROW_NORM1:ROW_NORM1 + 1, :D_MODEL])
    qkv = mm(xn, wqkv_ref[0])                                    # (S, 3D) f32

    # Head-major relayout (rows ordered (head, seq)) built as value concats of
    # static lane slices -- no scratch stores, no transposes.
    q_r = jnp.concatenate(
        [qkv[:, h * D_HEAD:(h + 1) * D_HEAD] for h in range(N_HEADS)], axis=0)
    k_r = jnp.concatenate(
        [qkv[:, D_MODEL + h * D_HEAD:D_MODEL + (h + 1) * D_HEAD]
         for h in range(N_HEADS)], axis=0)
    v_r = jnp.concatenate(
        [qkv[:, 2 * D_MODEL + h * D_HEAD:2 * D_MODEL + (h + 1) * D_HEAD]
         for h in range(N_HEADS)], axis=0)                       # (H*S, DH)

    # One full-width score matmul; bias carries off-head-block -1e9 mask and
    # (layer 0) the relative-position bias.
    s = jax.lax.dot_general(q_r.astype(jnp.bfloat16), k_r.astype(jnp.bfloat16),
                            (((1,), (1,)), ((), ())),
                            preferred_element_type=jnp.float32)  # (H*S, H*S)
    s = s + bias_ref[0]
    s = s - jnp.max(s, axis=-1, keepdims=True)
    p = jnp.exp(s)
    p = p * pl.reciprocal(jnp.sum(p, axis=-1, keepdims=True), approx=True)
    o_r = mm(p, v_r)                                             # (H*S, DH)

    attn = jnp.concatenate(
        [o_r[h * S:(h + 1) * S, :] for h in range(N_HEADS)], axis=1)  # (S, D)
    x = x + mm(attn, wo_ref[0])                                  # residual

    # ---------------- FiLM (self-conditioned) + GatedGELU FFN ----------------
    xn = rmsnorm(x, sm[ROW_NORM3:ROW_NORM3 + 1, :D_MODEL])
    gb = mm(xn, film_w_ref[0]) + sm[ROW_FILM_B:ROW_FILM_B + 1, :2 * D_MODEL]
    xn = gb[:, :D_MODEL] * xn + gb[:, D_MODEL:]
    h1 = mm(xn, ffn_w1_ref[0]) + sm[ROW_FFN_B1:ROW_FFN_B1 + 1, :2 * FFN_DIM]
    hidden = h1[:, :FFN_DIM]
    gate = h1[:, FFN_DIM:]
    # NewGELU (tanh approximation), exactly as in the PyTorch module.
    g = 0.5 * gate * (1.0 + jnp.tanh(
        SQRT_2_OVER_PI * (gate + 0.044715 * gate * gate * gate)))
    x = x + mm(hidden * g, ffn_w2_ref[0]) + sm[ROW_FFN_B2:ROW_FFN_B2 + 1, :D_MODEL]

    x_scr[...] = x

    # ---- last layer only: final norm + fused padded (lane-dense) heads ----
    @pl.when(l == pl.num_programs(1) - 1)
    def _():
        xf = rmsnorm(x, sm[ROW_FINAL:ROW_FINAL + 1, :D_MODEL])
        logits_ref[0] = mm(xf, out_w_ref[...]) + sm[ROW_OUT_B:ROW_OUT_B + 1, :]


# --------------------------- JAX glue (non-hot-path) --------------------------

def relative_position_bucket(relative_position, num_buckets, max_distance):
    # Bidirectional T5 bucketing (integer/index math; stays in JAX glue).
    num_buckets //= 2
    ret = (relative_position > 0).astype(jnp.int32) * num_buckets
    n = jnp.abs(relative_position)
    max_exact = num_buckets // 2
    is_small = n < max_exact
    val_if_large = max_exact + (
        jnp.log(jnp.maximum(n, 1).astype(jnp.float32) / max_exact)
        / math.log(max_distance / max_exact) * (num_buckets - max_exact)
    ).astype(jnp.int32)
    val_if_large = jnp.minimum(val_if_large, num_buckets - 1)
    return ret + jnp.where(is_small, n, val_if_large)


def compute_position_bias(rel_emb, q_len, k_len):
    ctx = jnp.arange(q_len)[:, None]
    mem = jnp.arange(k_len)[None, :]
    buckets = relative_position_bucket(mem - ctx, REL_BUCKETS, REL_MAX_DIST)
    vals = rel_emb[buckets]                     # (q, k, H)
    return jnp.transpose(vals, (2, 0, 1))       # (H, q, k)


def build_attn_bias(pos_bias, seq):
    """(N_LAYERS, H*S, H*S) additive bias: -1e9 off the per-head diagonal
    blocks; layer 0 additionally carries the relative-position bias."""
    eye = jnp.eye(N_HEADS, dtype=jnp.float32)                       # (H, H)
    blk = eye[:, None, :, None]                                     # (H,1,H,1)
    off = (1.0 - jnp.broadcast_to(blk, (N_HEADS, seq, N_HEADS, seq))) * NEG_INF
    pos_full = pos_bias[:, :, None, :] * blk                        # (H,S,H,S)
    bias0 = (pos_full + off).reshape(N_HEADS * seq, N_HEADS * seq)
    biasN = off.reshape(N_HEADS * seq, N_HEADS * seq)
    return jnp.stack([bias0] + [biasN] * (N_LAYERS - 1), axis=0)


def init_params(key):
    def nrm(k, shape, scale=0.02):
        return scale * jax.random.normal(k, shape, jnp.float32)

    bf16 = lambda a: a.astype(jnp.bfloat16)
    keys = iter(jax.random.split(key, 32))

    # TODO(synk): CodebookEmbeddingCorrectV2 reconstructed as per-codebook
    # (vocab+1, latent) embedding tables + 1x1 Conv1d to d_model.
    emb_tables = nrm(next(keys), (N_CODEBOOKS, VOCAB + 1, LATENT))
    emb_proj_w = nrm(next(keys), (N_CODEBOOKS * LATENT, D_MODEL))
    rel_bias_emb = nrm(next(keys), (REL_BUCKETS, N_HEADS))
    wqkv = nrm(next(keys), (N_LAYERS, D_MODEL, 3 * D_MODEL))   # fused [q|k|v]
    wo = nrm(next(keys), (N_LAYERS, D_MODEL, D_MODEL))
    film_w = nrm(next(keys), (N_LAYERS, D_MODEL, 2 * D_MODEL))  # fused [g|b]
    ffn_w1 = nrm(next(keys), (N_LAYERS, D_MODEL, 2 * FFN_DIM))
    ffn_w2 = nrm(next(keys), (N_LAYERS, FFN_DIM, D_MODEL))
    out_w = nrm(next(keys), (D_MODEL, LOGIT_DIM))               # fused heads
    out_w = jnp.pad(out_w, ((0, 0), (0, LOGIT_PAD - LOGIT_DIM)))

    # bias / norm vectors packed into one (N_LAYERS, 8, 256) f32 buffer
    emb_b = nrm(next(keys), (D_MODEL,))
    film_b = nrm(next(keys), (N_LAYERS, 2 * D_MODEL))
    ffn_b1 = nrm(next(keys), (N_LAYERS, 2 * FFN_DIM))
    ffn_b2 = nrm(next(keys), (N_LAYERS, D_MODEL))
    out_b = nrm(next(keys), (LOGIT_DIM,))
    smalls = jnp.zeros((N_LAYERS, N_SMALL_ROWS, SMALL_W), jnp.float32)
    smalls = smalls.at[:, ROW_NORM1, :D_MODEL].set(1.0)
    smalls = smalls.at[:, ROW_NORM3, :D_MODEL].set(1.0)
    smalls = smalls.at[:, ROW_FILM_B, :2 * D_MODEL].set(film_b)
    smalls = smalls.at[:, ROW_FFN_B1, :2 * FFN_DIM].set(ffn_b1)
    smalls = smalls.at[:, ROW_FFN_B2, :D_MODEL].set(ffn_b2)
    smalls = smalls.at[:, ROW_EMB_B, :D_MODEL].set(emb_b)
    smalls = smalls.at[:, ROW_FINAL, :D_MODEL].set(1.0)
    smalls = smalls.at[:, ROW_OUT_B, :LOGIT_DIM].set(out_b)

    return {
        "emb_tables": emb_tables,          # f32 (gathered in glue)
        "rel_bias_emb": rel_bias_emb,      # f32 (bucketed in glue)
        "emb_proj_w": bf16(emb_proj_w),
        "wqkv": bf16(wqkv), "wo": bf16(wo), "film_w": bf16(film_w),
        "ffn_w1": bf16(ffn_w1), "ffn_w2": bf16(ffn_w2), "out_w": bf16(out_w),
        "smalls": smalls,                  # f32
    }


def _cost_estimate(bsz, seq, bytes_accessed):
    hs = N_HEADS * seq
    per_row_layer = (D_MODEL * 3 * D_MODEL + D_MODEL * D_MODEL
                     + D_MODEL * 2 * D_MODEL + D_MODEL * 2 * FFN_DIM
                     + FFN_DIM * D_MODEL)
    flops = 2 * bsz * (seq * (N_CODEBOOKS * LATENT * D_MODEL
                              + D_MODEL * LOGIT_PAD
                              + N_LAYERS * per_row_layer)
                       + N_LAYERS * 2 * hs * hs * D_HEAD)
    transc = bsz * N_LAYERS * (hs * hs + seq * FFN_DIM) + bsz * seq * 4
    return pl.CostEstimate(flops=int(flops), transcendentals=int(transc),
                           bytes_accessed=int(bytes_accessed))


@jax.jit
def vampnet_forward(params, codes, mask=None):
    """codes: (B, n_codebooks, S) int32, mask: (B, n_codebooks, S) bool."""
    bsz, n_cb, seq = codes.shape
    assert n_cb == N_CODEBOOKS and seq == S

    masked = codes if mask is None else jnp.where(mask, MASK_TOKEN, codes)

    # ---- embedding gather (glue): per-codebook lookup, concat latents ----
    lat = [params["emb_tables"][c][masked[:, c, :]] for c in range(N_CODEBOOKS)]
    latents = jnp.concatenate(lat, axis=-1)          # (B, S, n_cb*latent) f32

    # T5 relative position bias (layer 0 only) folded together with the
    # block-diagonal head mask into one lane-dense additive bias per layer.
    pos_bias = compute_position_bias(params["rel_bias_emb"], seq, seq)
    attn_bias = build_attn_bias(pos_bias, seq)       # (L, H*S, H*S) f32

    operands = (latents, params["emb_proj_w"], attn_bias,
                params["wqkv"], params["wo"], params["film_w"],
                params["ffn_w1"], params["ffn_w2"], params["out_w"],
                params["smalls"])
    bytes_accessed = (sum(a.size * a.dtype.itemsize for a in operands)
                      + bsz * seq * LOGIT_PAD * 4)

    hs = N_HEADS * seq
    logits = pl.pallas_call(
        _vampnet_fused_kernel,
        out_shape=jax.ShapeDtypeStruct((bsz, seq, LOGIT_PAD), jnp.float32),
        grid_spec=pltpu.PrefetchScalarGridSpec(
            num_scalar_prefetch=0,
            grid=(bsz, N_LAYERS),
            in_specs=[
                pl.BlockSpec((1, seq, N_CODEBOOKS * LATENT),
                             lambda b, l: (b, 0, 0)),
                pl.BlockSpec((N_CODEBOOKS * LATENT, D_MODEL),
                             lambda b, l: (0, 0)),
                pl.BlockSpec((1, hs, hs), lambda b, l: (l, 0, 0)),
                pl.BlockSpec((1, D_MODEL, 3 * D_MODEL), lambda b, l: (l, 0, 0)),
                pl.BlockSpec((1, D_MODEL, D_MODEL), lambda b, l: (l, 0, 0)),
                pl.BlockSpec((1, D_MODEL, 2 * D_MODEL), lambda b, l: (l, 0, 0)),
                pl.BlockSpec((1, D_MODEL, 2 * FFN_DIM), lambda b, l: (l, 0, 0)),
                pl.BlockSpec((1, FFN_DIM, D_MODEL), lambda b, l: (l, 0, 0)),
                pl.BlockSpec((D_MODEL, LOGIT_PAD), lambda b, l: (0, 0)),
                pl.BlockSpec((1, N_SMALL_ROWS, SMALL_W), lambda b, l: (l, 0, 0)),
            ],
            out_specs=pl.BlockSpec((1, seq, LOGIT_PAD), lambda b, l: (b, 0, 0)),
            scratch_shapes=[pltpu.VMEM((seq, D_MODEL), jnp.float32)],
        ),
        compiler_params=pltpu.CompilerParams(
            dimension_semantics=("parallel", "arbitrary")),
        cost_estimate=_cost_estimate(bsz, seq, bytes_accessed),
    )(*operands)

    # strip lane padding, restore PyTorch output layout (B, n_cb, S, V+1)
    logits = (logits[:, :, :LOGIT_DIM]
              .reshape(bsz, seq, N_CODEBOOKS, VOCAB + 1))
    return jnp.transpose(logits, (0, 2, 1, 3))


if __name__ == "__main__":
    key = jax.random.PRNGKey(0)
    pkey, ckey, mkey = jax.random.split(key, 3)
    params = init_params(pkey)
    codes = jax.random.randint(ckey, (B, N_CODEBOOKS, S), 0, VOCAB,
                               dtype=jnp.int32)
    mask = jax.random.bernoulli(mkey, 0.5, (B, N_CODEBOOKS, S))

    logits = vampnet_forward(params, codes, mask)
    jax.block_until_ready(logits)
    assert logits.shape == (B, N_CODEBOOKS, S, VOCAB + 1)
    assert bool(jnp.all(jnp.isfinite(logits)))
    print("KERNEL_OK")
</pallas_src>

<mosaic_0001>
module attributes {stable_mosaic.version = 11 : i64} {
  func.func @_vampnet_fused_kernel(%arg0: i32, %arg1: i32, %arg2: memref<1x16x32xf32, #tpu.memory_space<vmem>>, %arg3: memref<32x64xbf16, #tpu.memory_space<vmem>>, %arg4: memref<1x64x64xf32, #tpu.memory_space<vmem>>, %arg5: memref<1x64x192xbf16, #tpu.memory_space<vmem>>, %arg6: memref<1x64x64xbf16, #tpu.memory_space<vmem>>, %arg7: memref<1x64x128xbf16, #tpu.memory_space<vmem>>, %arg8: memref<1x64x256xbf16, #tpu.memory_space<vmem>>, %arg9: memref<1x128x64xbf16, #tpu.memory_space<vmem>>, %arg10: memref<64x256xbf16, #tpu.memory_space<vmem>>, %arg11: memref<1x8x256xf32, #tpu.memory_space<vmem>>, %arg12: memref<1x16x256xf32, #tpu.memory_space<vmem>>, %arg13: memref<16x64xf32, #tpu.memory_space<vmem>>) attributes {dimension_semantics = [#tpu.dimension_semantics<parallel>, #tpu.dimension_semantics<arbitrary>], iteration_bounds = array<i64: 2, 2>, scalar_prefetch = 0 : i64, scratch_operands = 1 : i64, tpu.core_type = #tpu.core_type<tc>, window_params = [{transform_indices = @transform_0, window_bounds = array<i64: 1, 16, 32>}, {pipeline_mode = #tpu.pipeline_mode<synchronous>, transform_indices = @transform_1, window_bounds = array<i64: 32, 64>}, {transform_indices = @transform_2, window_bounds = array<i64: 1, 64, 64>}, {transform_indices = @transform_3, window_bounds = array<i64: 1, 64, 192>}, {transform_indices = @transform_4, window_bounds = array<i64: 1, 64, 64>}, {transform_indices = @transform_5, window_bounds = array<i64: 1, 64, 128>}, {transform_indices = @transform_6, window_bounds = array<i64: 1, 64, 256>}, {transform_indices = @transform_7, window_bounds = array<i64: 1, 128, 64>}, {pipeline_mode = #tpu.pipeline_mode<synchronous>, transform_indices = @transform_8, window_bounds = array<i64: 64, 256>}, {transform_indices = @transform_9, window_bounds = array<i64: 1, 8, 256>}, {transform_indices = @transform_10, window_bounds = array<i64: 1, 16, 256>}]} {
    %c0 = arith.constant 0 : index
    %c0_0 = arith.constant 0 : index
    %c0_1 = arith.constant 0 : index
    %0 = vector.load %arg11[%c0, %c0_0, %c0_1] : memref<1x8x256xf32, #tpu.memory_space<vmem>>, vector<1x8x256xf32>
    %1 = vector.shape_cast %0 : vector<1x8x256xf32> to vector<8x256xf32>
    %c0_i32 = arith.constant 0 : i32
    %2 = arith.cmpi eq, %arg1, %c0_i32 : i32
    %3 = arith.extui %2 : i1 to i32
    %c0_i32_2 = arith.constant 0 : i32
    %4 = arith.cmpi ne, %3, %c0_i32_2 : i32
    scf.if %4 {
      %c0_44 = arith.constant 0 : index
      %c0_45 = arith.constant 0 : index
      %c0_46 = arith.constant 0 : index
      %126 = vector.load %arg2[%c0_44, %c0_45, %c0_46] : memref<1x16x32xf32, #tpu.memory_space<vmem>>, vector<1x16x32xf32>
      %127 = vector.shape_cast %126 : vector<1x16x32xf32> to vector<16x32xf32>
      %c0_47 = arith.constant 0 : index
      %c0_48 = arith.constant 0 : index
      %128 = vector.load %arg3[%c0_47, %c0_48] : memref<32x64xbf16, #tpu.memory_space<vmem>>, vector<32x64xbf16>
      %129 = arith.truncf %127 : vector<16x32xf32> to vector<16x32xbf16>
      %cst_49 = arith.constant dense<0.000000e+00> : vector<16x64xf32>
      %130 = tpu.matmul %129, %128, %cst_49 {dimension_numbers = #tpu.dot_dimension_numbers<[1], [0], [0], [1], [0, 0, 1, 1], [], []>} : vector<16x32xbf16>, vector<32x64xbf16>, vector<16x64xf32> -> vector<16x64xf32>
      %131 = vector.extract_strided_slice %1 {offsets = [5, 0], sizes = [1, 64], strides = [1, 1]} : vector<8x256xf32> to vector<1x64xf32>
      %132 = vector.broadcast %131 : vector<1x64xf32> to vector<16x64xf32>
      %133 = arith.addf %130, %132 : vector<16x64xf32>
      %c0_50 = arith.constant 0 : index
      %c0_51 = arith.constant 0 : index
      %134 = vector.load %arg13[%c0_50, %c0_51] : memref<16x64xf32, #tpu.memory_space<vmem>>, vector<16x64xf32>
      tpu.vector_store %arg13[%c0_50, %c0_51], %133 {strides = array<i32>} : memref<16x64xf32, #tpu.memory_space<vmem>>, vector<16x64xf32>,
    } else {
    }
    %c0_3 = arith.constant 0 : index
    %c0_4 = arith.constant 0 : index
    %5 = vector.load %arg13[%c0_3, %c0_4] : memref<16x64xf32, #tpu.memory_space<vmem>>, vector<16x64xf32>
    %6 = vector.extract_strided_slice %1 {offsets = [0, 0], sizes = [1, 64], strides = [1, 1]} : vector<8x256xf32> to vector<1x64xf32>
    %7 = arith.mulf %5, %5 : vector<16x64xf32>
    %cst = arith.constant dense<0.000000e+00> : vector<16xf32>
    %8 = vector.multi_reduction <add>, %7, %cst [1] : vector<16x64xf32> to vector<16xf32>
    %9 = vector.shape_cast %8 : vector<16xf32> to vector<16x1xf32>
    %cst_5 = arith.constant 6.400000e+01 : f32
    %10 = vector.broadcast %cst_5 : f32 to vector<16x1xf32>
    %11 = arith.divf %9, %10 : vector<16x1xf32>
    %cst_6 = arith.constant 9.99999997E-7 : f32
    %12 = vector.broadcast %cst_6 : f32 to vector<16x1xf32>
    %13 = arith.addf %11, %12 : vector<16x1xf32>
    %14 = math.rsqrt %13 : vector<16x1xf32>
    %15 = vector.broadcast %14 : vector<16x1xf32> to vector<16x64xf32>
    %16 = arith.mulf %5, %15 : vector<16x64xf32>
    %17 = vector.broadcast %6 : vector<1x64xf32> to vector<16x64xf32>
    %18 = arith.mulf %16, %17 : vector<16x64xf32>
    %c0_7 = arith.constant 0 : index
    %c0_8 = arith.constant 0 : index
    %c0_9 = arith.constant 0 : index
    %19 = vector.load %arg5[%c0_7, %c0_8, %c0_9] : memref<1x64x192xbf16, #tpu.memory_space<vmem>>, vector<1x64x192xbf16>
    %20 = vector.shape_cast %19 : vector<1x64x192xbf16> to vector<64x192xbf16>
    %21 = arith.truncf %18 : vector<16x64xf32> to vector<16x64xbf16>
    %cst_10 = arith.constant dense<0.000000e+00> : vector<16x192xf32>
    %22 = tpu.matmul %21, %20, %cst_10 {dimension_numbers = #tpu.dot_dimension_numbers<[1], [0], [0], [1], [0, 0, 1, 1], [], []>} : vector<16x64xbf16>, vector<64x192xbf16>, vector<16x192xf32> -> vector<16x192xf32>
    %23 = vector.extract_strided_slice %22 {offsets = [0, 0], sizes = [16, 16], strides = [1, 1]} : vector<16x192xf32> to vector<16x16xf32>
    %24 = vector.extract_strided_slice %22 {offsets = [0, 16], sizes = [16, 16], strides = [1, 1]} : vector<16x192xf32> to vector<16x16xf32>
    %25 = vector.extract_strided_slice %22 {offsets = [0, 32], sizes = [16, 16], strides = [1, 1]} : vector<16x192xf32> to vector<16x16xf32>
    %26 = vector.extract_strided_slice %22 {offsets = [0, 48], sizes = [16, 16], strides = [1, 1]} : vector<16x192xf32> to vector<16x16xf32>
    %27 = tpu.concatenate %23, %24, %25, %26 in 0 : vector<16x16xf32>, vector<16x16xf32>, vector<16x16xf32>, vector<16x16xf32> -> vector<64x16xf32>
    %28 = vector.extract_strided_slice %22 {offsets = [0, 64], sizes = [16, 16], strides = [1, 1]} : vector<16x192xf32> to vector<16x16xf32>
    %29 = vector.extract_strided_slice %22 {offsets = [0, 80], sizes = [16, 16], strides = [1, 1]} : vector<16x192xf32> to vector<16x16xf32>
    %30 = vector.extract_strided_slice %22 {offsets = [0, 96], sizes = [16, 16], strides = [1, 1]} : vector<16x192xf32> to vector<16x16xf32>
    %31 = vector.extract_strided_slice %22 {offsets = [0, 112], sizes = [16, 16], strides = [1, 1]} : vector<16x192xf32> to vector<16x16xf32>
    %32 = tpu.concatenate %28, %29, %30, %31 in 0 : vector<16x16xf32>, vector<16x16xf32>, vector<16x16xf32>, vector<16x16xf32> -> vector<64x16xf32>
    %33 = vector.extract_strided_slice %22 {offsets = [0, 128], sizes = [16, 16], strides = [1, 1]} : vector<16x192xf32> to vector<16x16xf32>
    %34 = vector.extract_strided_slice %22 {offsets = [0, 144], sizes = [16, 16], strides = [1, 1]} : vector<16x192xf32> to vector<16x16xf32>
    %35 = vector.extract_strided_slice %22 {offsets = [0, 160], sizes = [16, 16], strides = [1, 1]} : vector<16x192xf32> to vector<16x16xf32>
    %36 = vector.extract_strided_slice %22 {offsets = [0, 176], sizes = [16, 16], strides = [1, 1]} : vector<16x192xf32> to vector<16x16xf32>
    %37 = tpu.concatenate %33, %34, %35, %36 in 0 : vector<16x16xf32>, vector<16x16xf32>, vector<16x16xf32>, vector<16x16xf32> -> vector<64x16xf32>
    %38 = arith.truncf %27 : vector<64x16xf32> to vector<64x16xbf16>
    %39 = arith.truncf %32 : vector<64x16xf32> to vector<64x16xbf16>
    %cst_11 = arith.constant dense<0.000000e+00> : vector<64x64xf32>
    %40 = tpu.matmul %38, %39, %cst_11 {dimension_numbers = #tpu.dot_dimension_numbers<[1], [1], [0], [0], [0, 0, 1, 0], [], []>} : vector<64x16xbf16>, vector<64x16xbf16>, vector<64x64xf32> -> vector<64x64xf32>
    %c0_12 = arith.constant 0 : index
    %c0_13 = arith.constant 0 : index
    %c0_14 = arith.constant 0 : index
    %41 = vector.load %arg4[%c0_12, %c0_13, %c0_14] : memref<1x64x64xf32, #tpu.memory_space<vmem>>, vector<1x64x64xf32>
    %42 = vector.shape_cast %41 : vector<1x64x64xf32> to vector<64x64xf32>
    %43 = arith.addf %40, %42 : vector<64x64xf32>
    %cst_15 = arith.constant dense<0xFF800000> : vector<64xf32>
    %44 = vector.multi_reduction <maximumf>, %43, %cst_15 [1] : vector<64x64xf32> to vector<64xf32>
    %45 = vector.shape_cast %44 : vector<64xf32> to vector<64x1xf32>
    %46 = vector.broadcast %45 : vector<64x1xf32> to vector<64x64xf32>
    %47 = arith.subf %43, %46 : vector<64x64xf32>
    %48 = math.exp %47 : vector<64x64xf32>
    %cst_16 = arith.constant dense<0.000000e+00> : vector<64xf32>
    %49 = vector.multi_reduction <add>, %48, %cst_16 [1] : vector<64x64xf32> to vector<64xf32>
    %50 = vector.shape_cast %49 : vector<64xf32> to vector<64x1xf32>
    %51 = tpu.reciprocal %50 {approx = true} : vector<64x1xf32> -> vector<64x1xf32>
    %52 = vector.broadcast %51 : vector<64x1xf32> to vector<64x64xf32>
    %53 = arith.mulf %48, %52 : vector<64x64xf32>
    %54 = arith.truncf %53 : vector<64x64xf32> to vector<64x64xbf16>
    %55 = arith.truncf %37 : vector<64x16xf32> to vector<64x16xbf16>
    %cst_17 = arith.constant dense<0.000000e+00> : vector<64x16xf32>
    %56 = tpu.matmul %54, %55, %cst_17 {dimension_numbers = #tpu.dot_dimension_numbers<[1], [0], [0], [1], [0, 0, 1, 1], [], []>} : vector<64x64xbf16>, vector<64x16xbf16>, vector<64x16xf32> -> vector<64x16xf32>
    %57 = vector.extract_strided_slice %56 {offsets = [0, 0], sizes = [16, 16], strides = [1, 1]} : vector<64x16xf32> to vector<16x16xf32>
    %58 = vector.extract_strided_slice %56 {offsets = [16, 0], sizes = [16, 16], strides = [1, 1]} : vector<64x16xf32> to vector<16x16xf32>
    %59 = vector.extract_strided_slice %56 {offsets = [32, 0], sizes = [16, 16], strides = [1, 1]} : vector<64x16xf32> to vector<16x16xf32>
    %60 = vector.extract_strided_slice %56 {offsets = [48, 0], sizes = [16, 16], strides = [1, 1]} : vector<64x16xf32> to vector<16x16xf32>
    %61 = tpu.concatenate %57, %58, %59, %60 in 1 : vector<16x16xf32>, vector<16x16xf32>, vector<16x16xf32>, vector<16x16xf32> -> vector<16x64xf32>
    %c0_18 = arith.constant 0 : index
    %c0_19 = arith.constant 0 : index
    %c0_20 = arith.constant 0 : index
    %62 = vector.load %arg6[%c0_18, %c0_19, %c0_20] : memref<1x64x64xbf16, #tpu.memory_space<vmem>>, vector<1x64x64xbf16>
    %63 = vector.shape_cast %62 : vector<1x64x64xbf16> to vector<64x64xbf16>
    %64 = arith.truncf %61 : vector<16x64xf32> to vector<16x64xbf16>
    %cst_21 = arith.constant dense<0.000000e+00> : vector<16x64xf32>
    %65 = tpu.matmul %64, %63, %cst_21 {dimension_numbers = #tpu.dot_dimension_numbers<[1], [0], [0], [1], [0, 0, 1, 1], [], []>} : vector<16x64xbf16>, vector<64x64xbf16>, vector<16x64xf32> -> vector<16x64xf32>
    %66 = arith.addf %5, %65 : vector<16x64xf32>
    %67 = vector.extract_strided_slice %1 {offsets = [1, 0], sizes = [1, 64], strides = [1, 1]} : vector<8x256xf32> to vector<1x64xf32>
    %68 = arith.mulf %66, %66 : vector<16x64xf32>
    %cst_22 = arith.constant dense<0.000000e+00> : vector<16xf32>
    %69 = vector.multi_reduction <add>, %68, %cst_22 [1] : vector<16x64xf32> to vector<16xf32>
    %70 = vector.shape_cast %69 : vector<16xf32> to vector<16x1xf32>
    %cst_23 = arith.constant 6.400000e+01 : f32
    %71 = vector.broadcast %cst_23 : f32 to vector<16x1xf32>
    %72 = arith.divf %70, %71 : vector<16x1xf32>
    %cst_24 = arith.constant 9.99999997E-7 : f32
    %73 = vector.broadcast %cst_24 : f32 to vector<16x1xf32>
    %74 = arith.addf %72, %73 : vector<16x1xf32>
    %75 = math.rsqrt %74 : vector<16x1xf32>
    %76 = vector.broadcast %75 : vector<16x1xf32> to vector<16x64xf32>
    %77 = arith.mulf %66, %76 : vector<16x64xf32>
    %78 = vector.broadcast %67 : vector<1x64xf32> to vector<16x64xf32>
    %79 = arith.mulf %77, %78 : vector<16x64xf32>
    %c0_25 = arith.constant 0 : index
    %c0_26 = arith.constant 0 : index
    %c0_27 = arith.constant 0 : index
    %80 = vector.load %arg7[%c0_25, %c0_26, %c0_27] : memref<1x64x128xbf16, #tpu.memory_space<vmem>>, vector<1x64x128xbf16>
    %81 = vector.shape_cast %80 : vector<1x64x128xbf16> to vector<64x128xbf16>
    %82 = arith.truncf %79 : vector<16x64xf32> to vector<16x64xbf16>
    %cst_28 = arith.constant dense<0.000000e+00> : vector<16x128xf32>
    %83 = tpu.matmul %82, %81, %cst_28 {dimension_numbers = #tpu.dot_dimension_numbers<[1], [0], [0], [1], [0, 0, 1, 1], [], []>} : vector<16x64xbf16>, vector<64x128xbf16>, vector<16x128xf32> -> vector<16x128xf32>
    %84 = vector.extract_strided_slice %1 {offsets = [2, 0], sizes = [1, 128], strides = [1, 1]} : vector<8x256xf32> to vector<1x128xf32>
    %85 = vector.broadcast %84 : vector<1x128xf32> to vector<16x128xf32>
    %86 = arith.addf %83, %85 : vector<16x128xf32>
    %87 = vector.extract_strided_slice %86 {offsets = [0, 0], sizes = [16, 64], strides = [1, 1]} : vector<16x128xf32> to vector<16x64xf32>
    %88 = arith.mulf %87, %79 : vector<16x64xf32>
    %89 = vector.extract_strided_slice %86 {offsets = [0, 64], sizes = [16, 64], strides = [1, 1]} : vector<16x128xf32> to vector<16x64xf32>
    %90 = arith.addf %88, %89 : vector<16x64xf32>
    %c0_29 = arith.constant 0 : index
    %c0_30 = arith.constant 0 : index
    %c0_31 = arith.constant 0 : index
    %91 = vector.load %arg8[%c0_29, %c0_30, %c0_31] : memref<1x64x256xbf16, #tpu.memory_space<vmem>>, vector<1x64x256xbf16>
    %92 = vector.shape_cast %91 : vector<1x64x256xbf16> to vector<64x256xbf16>
    %93 = arith.truncf %90 : vector<16x64xf32> to vector<16x64xbf16>
    %cst_32 = arith.constant dense<0.000000e+00> : vector<16x256xf32>
    %94 = tpu.matmul %93, %92, %cst_32 {dimension_numbers = #tpu.dot_dimension_numbers<[1], [0], [0], [1], [0, 0, 1, 1], [], []>} : vector<16x64xbf16>, vector<64x256xbf16>, vector<16x256xf32> -> vector<16x256xf32>
    %95 = vector.extract_strided_slice %1 {offsets = [3, 0], sizes = [1, 256], strides = [1, 1]} : vector<8x256xf32> to vector<1x256xf32>
    %96 = vector.broadcast %95 : vector<1x256xf32> to vector<16x256xf32>
    %97 = arith.addf %94, %96 : vector<16x256xf32>
    %98 = vector.extract_strided_slice %97 {offsets = [0, 0], sizes = [16, 128], strides = [1, 1]} : vector<16x256xf32> to vector<16x128xf32>
    %99 = vector.extract_strided_slice %97 {offsets = [0, 128], sizes = [16, 128], strides = [1, 1]} : vector<16x256xf32> to vector<16x128xf32>
    %cst_33 = arith.constant 5.000000e-01 : f32
    %100 = vector.broadcast %cst_33 : f32 to vector<16x128xf32>
    %101 = arith.mulf %100, %99 : vector<16x128xf32>
    %cst_34 = arith.constant 4.471500e-02 : f32
    %102 = vector.broadcast %cst_34 : f32 to vector<16x128xf32>
    %103 = arith.mulf %102, %99 : vector<16x128xf32>
    %104 = arith.mulf %103, %99 : vector<16x128xf32>
    %105 = arith.mulf %104, %99 : vector<16x128xf32>
    %106 = arith.addf %99, %105 : vector<16x128xf32>
    %cst_35 = arith.constant 0.797884583 : f32
    %107 = vector.broadcast %cst_35 : f32 to vector<16x128xf32>
    %108 = arith.mulf %107, %106 : vector<16x128xf32>
    %109 = math.tanh %108 : vector<16x128xf32>
    %cst_36 = arith.constant 1.000000e+00 : f32
    %110 = vector.broadcast %cst_36 : f32 to vector<16x128xf32>
    %111 = arith.addf %110, %109 : vector<16x128xf32>
    %112 = arith.mulf %101, %111 : vector<16x128xf32>
    %113 = arith.mulf %98, %112 : vector<16x128xf32>
    %c0_37 = arith.constant 0 : index
    %c0_38 = arith.constant 0 : index
    %c0_39 = arith.constant 0 : index
    %114 = vector.load %arg9[%c0_37, %c0_38, %c0_39] : memref<1x128x64xbf16, #tpu.memory_space<vmem>>, vector<1x128x64xbf16>
    %115 = vector.shape_cast %114 : vector<1x128x64xbf16> to vector<128x64xbf16>
    %116 = arith.truncf %113 : vector<16x128xf32> to vector<16x128xbf16>
    %cst_40 = arith.constant dense<0.000000e+00> : vector<16x64xf32>
    %117 = tpu.matmul %116, %115, %cst_40 {dimension_numbers = #tpu.dot_dimension_numbers<[1], [0], [0], [1], [0, 0, 1, 1], [], []>} : vector<16x128xbf16>, vector<128x64xbf16>, vector<16x64xf32> -> vector<16x64xf32>
    %118 = arith.addf %66, %117 : vector<16x64xf32>
    %119 = vector.extract_strided_slice %1 {offsets = [4, 0], sizes = [1, 64], strides = [1, 1]} : vector<8x256xf32> to vector<1x64xf32>
    %120 = vector.broadcast %119 : vector<1x64xf32> to vector<16x64xf32>
    %121 = arith.addf %118, %120 : vector<16x64xf32>
    %c0_41 = arith.constant 0 : index
    %c0_42 = arith.constant 0 : index
    %122 = vector.load %arg13[%c0_41, %c0_42] : memref<16x64xf32, #tpu.memory_space<vmem>>, vector<16x64xf32>
    tpu.vector_store %arg13[%c0_41, %c0_42], %121 {strides = array<i32>} : memref<16x64xf32, #tpu.memory_space<vmem>>, vector<16x64xf32>,
    %c1_i32 = arith.constant 1 : i32
    %123 = arith.cmpi eq, %arg1, %c1_i32 : i32
    %124 = arith.extui %123 : i1 to i32
    %c0_i32_43 = arith.constant 0 : i32
    %125 = arith.cmpi ne, %124, %c0_i32_43 : i32
    scf.if %125 {
      %126 = vector.extract_strided_slice %1 {offsets = [6, 0], sizes = [1, 64], strides = [1, 1]} : vector<8x256xf32> to vector<1x64xf32>
      %127 = arith.mulf %121, %121 : vector<16x64xf32>
      %cst_44 = arith.constant dense<0.000000e+00> : vector<16xf32>
      %128 = vector.multi_reduction <add>, %127, %cst_44 [1] : vector<16x64xf32> to vector<16xf32>
      %129 = vector.shape_cast %128 : vector<16xf32> to vector<16x1xf32>
      %cst_45 = arith.constant 6.400000e+01 : f32
      %130 = vector.broadcast %cst_45 : f32 to vector<16x1xf32>
      %131 = arith.divf %129, %130 : vector<16x1xf32>
      %cst_46 = arith.constant 9.99999997E-7 : f32
      %132 = vector.broadcast %cst_46 : f32 to vector<16x1xf32>
      %133 = arith.addf %131, %132 : vector<16x1xf32>
      %134 = math.rsqrt %133 : vector<16x1xf32>
      %135 = vector.broadcast %134 : vector<16x1xf32> to vector<16x64xf32>
      %136 = arith.mulf %121, %135 : vector<16x64xf32>
      %137 = vector.broadcast %126 : vector<1x64xf32> to vector<16x64xf32>
      %138 = arith.mulf %136, %137 : vector<16x64xf32>
      %c0_47 = arith.constant 0 : index
      %c0_48 = arith.constant 0 : index
      %139 = vector.load %arg10[%c0_47, %c0_48] : memref<64x256xbf16, #tpu.memory_space<vmem>>, vector<64x256xbf16>
      %140 = arith.truncf %138 : vector<16x64xf32> to vector<16x64xbf16>
      %cst_49 = arith.constant dense<0.000000e+00> : vector<16x256xf32>
      %141 = tpu.matmul %140, %139, %cst_49 {dimension_numbers = #tpu.dot_dimension_numbers<[1], [0], [0], [1], [0, 0, 1, 1], [], []>} : vector<16x64xbf16>, vector<64x256xbf16>, vector<16x256xf32> -> vector<16x256xf32>
      %142 = vector.extract_strided_slice %1 {offsets = [7, 0], sizes = [1, 256], strides = [1, 1]} : vector<8x256xf32> to vector<1x256xf32>
      %143 = vector.broadcast %142 : vector<1x256xf32> to vector<16x256xf32>
      %144 = arith.addf %141, %143 : vector<16x256xf32>
      %c0_50 = arith.constant 0 : index
      %c0_51 = arith.constant 0 : index
      %c0_52 = arith.constant 0 : index
      %145 = vector.load %arg12[%c0_50, %c0_51, %c0_52] : memref<1x16x256xf32, #tpu.memory_space<vmem>>, vector<1x16x256xf32>
      %146 = vector.shape_cast %145 : vector<1x16x256xf32> to vector<16x256xf32>
      %147 = vector.shape_cast %144 : vector<16x256xf32> to vector<1x16x256xf32>
      tpu.vector_store %arg12[%c0_50, %c0_51, %c0_52], %147 {strides = array<i32>} : memref<1x16x256xf32, #tpu.memory_space<vmem>>, vector<1x16x256xf32>,
    } else {
    }
    return
  }
  func.func @transform_0(%arg0: i32, %arg1: i32) -> (i32, i32, i32) {
    %c0_i32 = arith.constant 0 : i32
    %c0_i32_0 = arith.constant 0 : i32
    %c0_i32_1 = arith.constant 0 : i32
    return %arg0, %c0_i32, %c0_i32_0 : i32, i32, i32
  }
  func.func @transform_1(%arg0: i32, %arg1: i32) -> (i32, i32) {
    %c0_i32 = arith.constant 0 : i32
    %c0_i32_0 = arith.constant 0 : i32
    %c0_i32_1 = arith.constant 0 : i32
    return %c0_i32, %c0_i32_0 : i32, i32
  }
  func.func @transform_2(%arg0: i32, %arg1: i32) -> (i32, i32, i32) {
    %c0_i32 = arith.constant 0 : i32
    %c0_i32_0 = arith.constant 0 : i32
    %c0_i32_1 = arith.constant 0 : i32
    return %arg1, %c0_i32, %c0_i32_0 : i32, i32, i32
  }
  func.func @transform_3(%arg0: i32, %arg1: i32) -> (i32, i32, i32) {
    %c0_i32 = arith.constant 0 : i32
    %c0_i32_0 = arith.constant 0 : i32
    %c0_i32_1 = arith.constant 0 : i32
    return %arg1, %c0_i32, %c0_i32_0 : i32, i32, i32
  }
  func.func @transform_4(%arg0: i32, %arg1: i32) -> (i32, i32, i32) {
    %c0_i32 = arith.constant 0 : i32
    %c0_i32_0 = arith.constant 0 : i32
    %c0_i32_1 = arith.constant 0 : i32
    return %arg1, %c0_i32, %c0_i32_0 : i32, i32, i32
  }
  func.func @transform_5(%arg0: i32, %arg1: i32) -> (i32, i32, i32) {
    %c0_i32 = arith.constant 0 : i32
    %c0_i32_0 = arith.constant 0 : i32
    %c0_i32_1 = arith.constant 0 : i32
    return %arg1, %c0_i32, %c0_i32_0 : i32, i32, i32
  }
  func.func @transform_6(%arg0: i32, %arg1: i32) -> (i32, i32, i32) {
    %c0_i32 = arith.constant 0 : i32
    %c0_i32_0 = arith.constant 0 : i32
    %c0_i32_1 = arith.constant 0 : i32
    return %arg1, %c0_i32, %c0_i32_0 : i32, i32, i32
  }
  func.func @transform_7(%arg0: i32, %arg1: i32) -> (i32, i32, i32) {
    %c0_i32 = arith.constant 0 : i32
    %c0_i32_0 = arith.constant 0 : i32
    %c0_i32_1 = arith.constant 0 : i32
    return %arg1, %c0_i32, %c0_i32_0 : i32, i32, i32
  }
  func.func @transform_8(%arg0: i32, %arg1: i32) -> (i32, i32) {
    %c0_i32 = arith.constant 0 : i32
    %c0_i32_0 = arith.constant 0 : i32
    %c0_i32_1 = arith.constant 0 : i32
    return %c0_i32, %c0_i32_0 : i32, i32
  }
  func.func @transform_9(%arg0: i32, %arg1: i32) -> (i32, i32, i32) {
    %c0_i32 = arith.constant 0 : i32
    %c0_i32_0 = arith.constant 0 : i32
    %c0_i32_1 = arith.constant 0 : i32
    return %arg1, %c0_i32, %c0_i32_0 : i32, i32, i32
  }
  func.func @transform_10(%arg0: i32, %arg1: i32) -> (i32, i32, i32) {
    %c0_i32 = arith.constant 0 : i32
    %c0_i32_0 = arith.constant 0 : i32
    %c0_i32_1 = arith.constant 0 : i32
    return %arg0, %c0_i32, %c0_i32_0 : i32, i32, i32
  }
}

</mosaic_0001>

<bundles_post_ra>
// kernel: vampnet_forward.1
= control target key start
LH: loop header
LB: loop body
LE: loop exit
PB: predicated region body
PF: predicated region fallthrough
CT: control target
= control target key end

     0   :  { %s2312_s13 = smov 0   ;;  %s2314_s14 = smov 0   ;;  %s2629_s0 = inlined_call_operand.vmem [shape: f32[2,16,32], index: 0, kind: input, shape index: {}]   ;;  %s2630_s1 = inlined_call_operand.vmem [shape: bf16[32,64], index: 1, kind: input, shape index: {}]   ;;  %s2631_s2 = inlined_call_operand.vmem [shape: f32[2,64,64], index: 2, kind: input, shape index: {}]   ;;  %s2632_s3 = inlined_call_operand.vmem [shape: bf16[2,64,192], index: 3, kind: input, shape index: {}]   ;;  %s2633_s4 = inlined_call_operand.vmem [shape: bf16[2,64,64], index: 4, kind: input, shape index: {}]   ;;  %s2634_s5 = inlined_call_operand.vmem [shape: bf16[2,64,128], index: 5, kind: input, shape index: {}]   ;;  %s2635_s6 = inlined_call_operand.vmem [shape: bf16[2,64,256], index: 6, kind: input, shape index: {}]   ;;  %s2636_s7 = inlined_call_operand.vmem [shape: bf16[2,128,64], index: 7, kind: input, shape index: {}]   ;;  %s2637_s8 = inlined_call_operand.vmem [shape: bf16[64,256], index: 8, kind: input, shape index: {}]   ;;  %s2638_s9 = inlined_call_operand.vmem [shape: f32[2,8,256], index: 9, kind: input, shape index: {}]   ;;  %s2639_s10 = inlined_call_operand.vmem [shape: f32[2,16,256], index: 10, kind: output, shape index: {}]  }
   0x1   :  { %2643 = sst [smem:[#allocation8_spill]] %s2629_s0  ;;  %s2316_s15 = smov 0  }
   0x2   :  { %2644 = sst [smem:[#allocation9_spill]] %s2631_s2  ;;  %s2318_s16 = smov 0  }
   0x3   :  { %2645 = sst [smem:[#allocation10_spill]] %s2632_s3  ;;  %s2320_s17 = smov 0  }
   0x4   :  { %2646 = sst [smem:[#allocation11_spill]] %s2635_s6 }
   0x5 LB: > { %2647 = sst [smem:[#allocation3_spill]] %s2234_s15  ;;  %s29_s18 = sadd.s32 1, %s2234_s15  ;;  %s2242_s17 = sphi %s2320_s17, %s20_s17   ;;  %s2238_s16 = sphi %s2318_s16, %s2660_s16   ;;  %s2234_s15 = sphi %s2316_s15, %s2659_s15   ;;  %s2230_s14 = sphi %s2314_s14, %s2658_s14   ;;  %s2226_s13 = sphi %s2312_s13, %s2657_s13  }
   0x6   : > { %2648 = sst [smem:[#allocation4_spill]] %s2238_s16  ;;  %s32_s19 = sadd.s32 1, %s2238_s16 }
   0x7   : > { %2649 = sst [smem:[#allocation5_spill]] %s2242_s17  ;;  %p30_p0 = scmp.ge.s32.totalorder %s29_s18, 2 }
   0x8   : > { %p1790_p1 = scmp.ge.s32.totalorder %s2242_s17, 1  ;;  %p394_p2 = scmp.lt.s32.totalorder %s2242_s17, 5 }
   0x9   : > { %s2662_s18 = smov (%p30_p0, %s29_s18), 0  ;;  %s2664_s19 = smov (!%p30_p0, %s32_s19), %s2238_s16 }
   0xa   : > { %2650 = sst [smem:[#allocation6_spill]] %s2662_s18  ;;  %p395_p3 = pnand %p1790_p1, %p394_p2 }
   0xb   : > { %p34_p4 = scmp.ge.s32.totalorder %s2664_s19, 2  ;;  %p467_p5 = scmp.lt.s32.totalorder (!%p395_p3), %s2230_s14, 1 }
   0xc   : > { %398 = sbr.rel (%p395_p3) target bundleno = 3228 (0xc9c), region = 60  ;;  %p472_p6 = scmp.lt.s32.totalorder (!%p395_p3), %s2226_s13, 1 }
   0xd   : > { %s2666_s19 = smov (%p34_p4, %s2664_s19), 0  ;;  %s2652_s0 = sld [smem:[#allocation8_spill]] (!%p395_p3) }
   0xe   : > { %2651 = sst [smem:[#allocation7_spill]] %s2666_s19  ;;  %p1809_p7 = scmp.ne.s32.totalorder (!%p395_p3), %s2226_s13, 0 }
   0xf   : > { %s2653_s2 = sld [smem:[#allocation9_spill]] (!%p395_p3) }
  0x10   : > { %s2654_s3 = sld [smem:[#allocation10_spill]] (!%p395_p3) }
  0x11   : > { %s2668_s14 = smov (!%p467_p5, %s2230_s14), 1  ;;  %s2655_s6 = sld [smem:[#allocation11_spill]] }
  0x12   : > { %s473_s20 = scalar_select %p472_p6, %s2226_s13, 1 }
  0x13   : > { %s1869_s21 = sshll.u32 %s2668_s14, 4  ;;  %s1877_s22 = sshll.u32 %s2668_s14, 5 }
  0x14   : > { %s471_s25 = scalar_lea.vmem %s2652_s0, %s1869_s21  ;;  %s1870_s26 = sshll.u32 %s473_s20, 6 }
  0x15   : > { %s2352_s29 = scalar_lea.vmem %s2653_s2, %s1870_s26  ;;  %s1872_s19 = sshll.u32 %s473_s20, 5 }
  0x16   : > { %s2357_s12 = scalar_lea.vmem %s2654_s3, %s1870_s26  ;;  %s2367_s21 = scalar_lea.vmem %s2633_s4, %s1872_s19 }
  0x17   : > { %s2362_s14 = scalar_lea.vmem %s2655_s6, %s1870_s26  ;;  %s2372_s28 = scalar_lea.vmem %s2634_s5, %s1872_s19 }
  0x18   : > { %s2377_s11 = scalar_lea.vmem %s2636_s7, %s1870_s26  ;;  %s1876_s2 = sshll.u32 %s473_s20, 4 }
  0x19   : > { %s506_s18 = scalar_lea.vmem %s2638_s9, %s1876_s2  ;;  %s2385_s15 = scalar_lea.vmem %s2639_s10, %s1877_s22 }
  0x1a   : > { %v2387_v0 = vld [vmem:[%s506_s18] sm:$0xff]  ;;  %v2389_v1 = vld [vmem:[%s506_s18 + $0x8] sm:$0xff]  ;;  %518 = sbr.rel (%p1809_p7) target bundleno = 240 (0xf0), region = 64 }
  0x1f   : > { %v2057_v2 = vld [vmem:[%s2630_s1 + $0x8] sm:$0xff]   ;;  %v2244_v3 = vmov 0.0   ;;  %v2058_v4 = vld [vmem:[%s2630_s1] sm:$0xff]   ;;  %vm2245_vm0 = vmmov 0   ;;  %vm542_vm1 = vcmask 261120   ;;  %v526_v8 = vlaneseq }
  0x20   : > { %1916 = vmatprep.subr.bf16.mxu0 %v2244_v3  ;;  %1920 = vmatprep.mubr.msk.bf16.mxu0 %vm2245_vm0, %v2244_v3  ;;  %v519_v5 = vld [vmem:[%s471_s25] sm:$0xff]  ;;  %v520_v6 = vld [vmem:[%s471_s25 + $0x8] sm:$0xff]  ;;  %vm587_vm2 = vcmask 523264  }
  0x21   : > { %1917 = vmatpush3.bf16.msra.mxu0 %v2057_v2  ;;  %v525_v7 = vpack.c.bf16 %v520_v6, %v519_v5  ;;  %v527_v9 = vshrl.u32 %v526_v8, 7 }
  0x22   : > { %1918 = vmatprep.subr.bf16.mxu0 %v2244_v3 }
  0x23   : > { %v528_v10 = vsub.s32 5, %v527_v9 }
  0x25   : > { %1919 = vmatpush3.bf16.msra.mxu0 %v2058_v4  ;;  %v529_v11 = vrot.slane %v2387_v0, %v528_v10 }
  0x28   : > { %1921 = vmatmul.mubr.msk.bf16.vlgmr.msra.gmra.mxu0 %vm542_vm1, %v525_v7 }
  0xe8   : > { %v580_v12 = vpop.f32.mrf.mxu0 }
  0xe9   : > { %v581_v13 = vadd.f32 %v580_v12, %v529_v11 }
  0xea   : > { %v1922_v14 = vpop.f32.mrf.mxu0 }
  0xeb   : > { %588 = vst.msk [vmem:[#allocation2] sm:$0xff] %vm587_vm2, %v581_v13 }
  0xec   : > { %v583_v15 = vpop.f32.mrf.mxu0 }
  0xed   : > { %v584_v16 = vadd.f32 %v583_v15, %v529_v11 }
  0xee   : > { %v1923_v17 = vpop.f32.mrf.mxu0 }
  0xef   : > { %589 = vst.msk [vmem:[#allocation2 + $0x8] sm:$0xff] %vm587_vm2, %v584_v16 }
  0xf0 PF: > { %vm594_vm3 = vcmask 523264   ;;  %v2104_v24 = vld [vmem:[%s2357_s12 + $0x34] ss:$8 sps:$4 sm:$0xff]   ;;  %v2106_v25 = vld [vmem:[%s2357_s12 + $0x30] ss:$8 sps:$4 sm:$0xff]   ;;  %v2246_v28 = vmov 0   ;;  %v610_v39 = vlaneseq }
  0xf1   : > { %v2107_v26 = vld [vmem:[%s2357_s12 + $0x24] ss:$8 sps:$4 sm:$0xff]   ;;  %676 = vmatprep.subr.bf16.mxu0 %v2104_v24  ;;  %v2109_v27 = vld [vmem:[%s2357_s12 + $0x20] ss:$8 sps:$4 sm:$0xff]   ;;  %700 = vmatprep.mubr.bf16.mxu0 %v2246_v28  ;;  %v2110_v29 = vld [vmem:[%s2357_s12 + $0x14] ss:$8 sps:$4 sm:$0xff]  }
  0xf2   : > { %v2399_v18 = vld [vmem:[#allocation2] sm:$0xff]  ;;  %677 = vmatpush1.bf16.msra.mxu0 %v2106_v25  ;;  %v2112_v30 = vld [vmem:[%s2357_s12 + $0x10] ss:$8 sps:$4 sm:$0xff]   ;;  %v2418_v40 = vshrl.u32 %v610_v39, 7  ;;  %vm775_vm4 = vcmask 130048   ;;  %s2247_s6 = smov 112  }
  0xf3   : > { %v592_v20 = vmul.f32 %v2399_v18, %v2399_v18  ;;  %678 = vmatprep.subr.bf16.mxu0 %v2107_v26  ;;  %v2113_v31 = vld [vmem:[%s2357_s12 + $0x4] ss:$8 sps:$4 sm:$0xff]   ;;  %v2115_v32 = vld [vmem:[%s2357_s12] ss:$8 sps:$4 sm:$0xff]   ;;  %s2248_s17 = smov 80   ;;  %s2249_s20 = smov 96  }
  0xf4   : > { %v612_v41 = vsub.s32 0, %v2418_v40  ;;  %s2250_s22 = smov 64   ;;  %v755_v14 = vld [vmem:[%s2352_s29] sm:$0xff]  ;;  %v757_v15 = vld [vmem:[%s2352_s29 + $0x10] sm:$0xff]  ;;  %v758_v24 = vld [vmem:[%s2352_s29 + $0x18] sm:$0xff]  ;;  %s2252_s25 = smov 16  }
  0xf5   : > { %v595_v22 = vsel %vm594_vm3, %v592_v20, 0.0  ;;  %vm2253_vm5 = vmmov 0   ;;  %s2254_s26 = smov 48   ;;  %vm1064_vm6 = vcmask 261120   ;;  %vm1067_vm7 = vcmask 392192   ;;  %p1857_p8 = scmp.ne.s32.totalorder %s2226_s13, 1 }
  0xf6   : > { %v2401_v19 = vld [vmem:[#allocation2 + $0x8] sm:$0xff]  ;;  %596 = vadd.xlane.f32.xlu0 %v595_v22  ;;  %679 = vmatpush1.bf16.msra.mxu0 %v2109_v27  ;;  %v613_v44 = vrot.slane %v2387_v0, %v612_v41 }
  0xf7   : > { %v593_v21 = vmul.f32 %v2401_v19, %v2401_v19  ;;  %680 = vmatprep.subr.bf16.mxu0 %v2110_v29  ;;  %v759_v29 = vld [vmem:[%s2352_s29 + $0x20] sm:$0xff] }
  0xf9   : > { %v598_v23 = vsel %vm594_vm3, %v593_v21, 0.0  ;;  %v756_v21 = vld [vmem:[%s2352_s29 + $0x8] sm:$0xff] }
  0xfa   : > { %599 = vadd.xlane.f32.xlu0 %v598_v23  ;;  %681 = vmatpush1.bf16.msra.mxu0 %v2112_v30 }
  0xfb   : > { %682 = vmatprep.subr.bf16.mxu0 %v2113_v31 }
  0xfe   : > { %683 = vmatpush1.bf16.msra.mxu0 %v2115_v32 }
 0x17f   : > { %v597_v33 = vpop.xlane.xlu0 %596 }
 0x180   : > { %v602_v34 = vmul.f32 0.015625, %v597_v33  ;;  %v761_v33 = vld [vmem:[%s2352_s29 + $0x30] sm:$0xff] }
 0x182   : > { %v604_v35 = vadd.f32 1e-06, %v602_v34 }
 0x183   : > { %v600_v36 = vpop.xlane.xlu0 %599 }
 0x184   : > { %2144 = vrsqrt.f32 %v604_v35  ;;  %v603_v37 = vmul.f32 0.015625, %v600_v36 }
 0x186   : > { %v605_v38 = vadd.f32 1e-06, %v603_v37  ;;  %v760_v37 = vld [vmem:[%s2352_s29 + $0x28] sm:$0xff] }
 0x188   : > { %2146 = vrsqrt.f32 %v605_v38 }
 0x191   : > { %v2145_v42 = vpop.eup %2144 }
 0x192   : > { %v608_v43 = vmul.f32 %v2145_v42, %v2399_v18  ;;  %v762_v42 = vld [vmem:[%s2352_s29 + $0x38] sm:$0xff]  ;;  %s2255_s29 = smov 32  }
 0x194   : > { %v614_v47 = vmul.f32 %v613_v44, %v608_v43 }
 0x195   : > { %v2147_v45 = vpop.eup %2146 }
 0x196   : > { %v609_v46 = vmul.f32 %v2147_v45, %v2401_v19 }
 0x198   : > { %v615_v48 = vmul.f32 %v613_v44, %v609_v46 }
 0x19a   : > { %v624_v49 = vpack.c.bf16 %v615_v48, %v614_v47 }
 0x19c   : > { %1821 = vmatmul.mubr.msk.bf16.vlgmr.msra.gmra.mxu0 %vm594_vm3, %v624_v49 }
 0x25c   : > { %v702_v50 = vpop.f32.mrf.mxu0 }
 0x25e   : > { %v2425_v51 = vpop.f32.mrf.mxu0 }
 0x260   : > { %v706_v52 = vpop.f32.mrf.mxu0 }
 0x261   : > { %v2069_v53 = vpack.i.bf16 %v706_v52, %v702_v50  ;;  %v751_v54 = vpack.c.bf16 %v706_v52, %v702_v50 }
 0x262   : > { %v2462_v49 = vpop.f32.mrf.mxu0 }
 0x263   : > { %2070 = vrot.lane.b32.xlu0 %v2069_v53, %s2247_s6  ;;  %2060 = vrot.lane.b32.xlu1 %v2069_v53, %s2248_s17  ;;  %v2466_v50 = vpack.i.bf16 %v2462_v49, %v2425_v51 }
 0x264   : > { %1932 = vmatprep.mubr.msk.bf16.mxu1 %vm775_vm4, %v751_v54 }
 0x267   : > { %2065 = vrot.lane.b32.xlu1 %v2069_v53, %s2249_s20 }
 0x2d5   : > { %v2061_v55 = vpop.permute.xlu1 %2060  ;;  %v2071_v59 = vpop.permute.xlu0 %2070 }
 0x2d6   : > { %v2063_v56 = vunpack.i.h.bf16 %v2061_v55  ;;  %v2062_v57 = vunpack.i.l.bf16 %v2061_v55  ;;  %v2073_v63 = vunpack.i.h.bf16 %v2071_v59  ;;  %v2072_v2 = vunpack.i.l.bf16 %v2071_v59 }
 0x2d8   : > { %v754_v58 = vpack.c.bf16 %v2063_v56, %v2062_v57  ;;  %v752_v4 = vpack.c.bf16 %v2073_v63, %v2072_v2 }
 0x2d9   : > { %v2066_v60 = vpop.permute.xlu1 %2065 }
 0x2da   : > { %v2068_v61 = vunpack.i.h.bf16 %v2066_v60  ;;  %v2067_v62 = vunpack.i.l.bf16 %v2066_v60  ;;  %773 = vrot.lane.b32.xlu1 %v754_v58, %s2250_s22 }
 0x2dc   : > { %v753_v3 = vpack.c.bf16 %v2068_v61, %v2067_v62 }
 0x2de   : > { %771 = vrot.lane.b32.xlu1 %v753_v3, %s2250_s22 }
 0x2e2   : > { %769 = vrot.lane.b32.xlu1 %v752_v4, %s2250_s22 }
 0x2e6   : > { %767 = vrot.lane.b32.xlu1 %v751_v54, %s2250_s22 }
 0x34c   : > { %v774_v5 = vpop.permute.xlu1 %773 }
 0x34d   : > { %2000 = vmatprep.subr.msk.bf16.mxu1 %vm775_vm4, %v774_v5  ;;  %v798_v6 = vsel %vm775_vm4, %v774_v5, 0 }
 0x34e   : > { %1925 = vmatpush3.bf16.xpose.msra.mxu1 %v798_v6 }
 0x350   : > { %v772_v7 = vpop.permute.xlu1 %771 }
 0x351   : > { %2001 = vmatprep.subr.msk.bf16.mxu1 %vm775_vm4, %v772_v7  ;;  %v795_v8 = vsel %vm775_vm4, %v772_v7, 0 }
 0x354   : > { %v770_v9 = vpop.permute.xlu1 %769 }
 0x355   : > { %v792_v10 = vsel %vm775_vm4, %v770_v9, 0 }
 0x356   : > { %1927 = vmatpush3.bf16.xpose.msra.mxu1 %v795_v8 }
 0x357   : > { %2002 = vmatprep.subr.msk.bf16.mxu1 %vm775_vm4, %v770_v9 }
 0x358   : > { %v768_v11 = vpop.permute.xlu1 %767 }
 0x359   : > { %v789_v12 = vsel %vm775_vm4, %v768_v11, 0 }
 0x35e   : > { %1929 = vmatpush3.bf16.xpose.msra.mxu1 %v792_v10 }
 0x35f   : > { %2003 = vmatprep.subr.msk.bf16.mxu1 %vm775_vm4, %v768_v11 }
 0x366   : > { %1931 = vmatpush3.bf16.xpose.msra.mxu1 %v789_v12 }
 0x36d   : > { %1933 = vmatmul.mubr.msk.bf16.vlgmr.msra.gmra.mxu1 %vm775_vm4, %v752_v4 }
 0x36e   : > { %1936 = vmatprep.mubr.msk.bf16.mxu1 %vm775_vm4, %v753_v3 }
 0x375   : > { %1937 = vmatmul.mubr.msk.bf16.gmra.mxu1 %vm775_vm4, %v754_v58 }
 0x42d   : > { %v1934_v13 = vpop.f32.mrf.mxu1 }
 0x42e   : > { %v843_v22 = vadd.f32 %v1934_v13, %v757_v15 }
 0x42f   : > { %v834_v16 = vpop.f32.mrf.mxu1 }
 0x430   : > { %v835_v17 = vadd.f32 %v834_v16, %v755_v14  ;;  %v871_v32 = vsel %vm594_vm3, %v843_v22, -inf }
 0x431   : > { %v1935_v20 = vpop.f32.mrf.mxu1 }
 0x432   : > { %v865_v23 = vsel %vm594_vm3, %v835_v17, -inf  ;;  %v846_v30 = vadd.f32 %v1935_v20, %v758_v24 }
 0x433   : > { %v837_v25 = vpop.f32.mrf.mxu1  ;;  %866 = vmax.xlane.f32.xlu1 %v865_v23 }
 0x434   : > { %v838_v26 = vadd.f32 %v837_v25, %v756_v21  ;;  %v874_v39 = vsel %vm594_vm3, %v846_v30, -inf }
 0x435   : > { %v1938_v27 = vpop.f32.mrf.mxu1 }
 0x436   : > { %v868_v31 = vsel %vm594_vm3, %v838_v26, -inf  ;;  %v859_v38 = vadd.f32 %v1938_v27, %v761_v33 }
 0x437   : > { %v850_v34 = vpop.f32.mrf.mxu1  ;;  %869 = vmax.xlane.f32.xlu0 %v868_v31  ;;  %872 = vmax.xlane.f32.xlu1 %v871_v32 }
 0x438   : > { %v851_v35 = vadd.f32 %v850_v34, %v759_v29  ;;  %v883_v47 = vsel %vm594_vm3, %v859_v38, -inf }
 0x439   : > { %v1939_v36 = vpop.f32.mrf.mxu1 }
 0x43a   : > { %v877_v41 = vsel %vm594_vm3, %v851_v35, -inf  ;;  %v862_v45 = vadd.f32 %v1939_v36, %v762_v42 }
 0x43b   : > { %v853_v43 = vpop.f32.mrf.mxu1  ;;  %875 = vmax.xlane.f32.xlu0 %v874_v39  ;;  %878 = vmax.xlane.f32.xlu1 %v877_v41 }
 0x43c   : > { %v854_v44 = vadd.f32 %v853_v43, %v760_v37  ;;  %v886_v48 = vsel %vm594_vm3, %v862_v45, -inf }
 0x43e   : > { %v880_v46 = vsel %vm594_vm3, %v854_v44, -inf }
 0x43f   : > { %881 = vmax.xlane.f32.xlu0 %v880_v46  ;;  %884 = vmax.xlane.f32.xlu1 %v883_v47 }
 0x443   : > { %887 = vmax.xlane.f32.xlu0 %v886_v48 }
 0x450   : > { %2075 = vrot.lane.b32.xlu1 %v2466_v50, %s2248_s17 }
 0x4bc   : > { %v867_v52 = vpop.xlane.xlu1 %866 }
 0x4bd   : > { %v889_v53 = vsub.f32 %v835_v17, %v867_v52 }
 0x4bf   : > { %v897_v59 = vmul.f32 1.442695, %v889_v53 }
 0x4c0   : > { %v870_v54 = vpop.xlane.xlu0 %869  ;;  %v873_v55 = vpop.xlane.xlu1 %872 }
 0x4c1   : > { %v891_v56 = vsub.f32 %v843_v22, %v873_v55  ;;  %v890_v57 = vsub.f32 %v838_v26, %v870_v54 }
 0x4c3   : > { %v901_v58 = vmul.f32 1.442695, %v891_v56  ;;  %v899_v63 = vmul.f32 1.442695, %v890_v57 }
 0x4c4   : > { %v876_v60 = vpop.xlane.xlu0 %875  ;;  %v879_v61 = vpop.xlane.xlu1 %878 }
 0x4c5   : > { %v892_v62 = vsub.f32 %v846_v30, %v876_v60  ;;  %2148 = vpow2.f32 %v901_v58  ;;  %v893_v3 = vsub.f32 %v851_v35, %v879_v61 }
 0x4c6   : > { %2150 = vpow2.f32 %v897_v59 }
 0x4c7   : > { %v903_v2 = vmul.f32 1.442695, %v892_v62  ;;  %v905_v9 = vmul.f32 1.442695, %v893_v3 }
 0x4c8   : > { %v882_v4 = vpop.xlane.xlu0 %881  ;;  %v885_v5 = vpop.xlane.xlu1 %884 }
 0x4c9   : > { %2152 = vpow2.f32 %v903_v2  ;;  %v895_v6 = vsub.f32 %v859_v38, %v885_v5  ;;  %v894_v7 = vsub.f32 %v854_v44, %v882_v4 }
 0x4ca   : > { %2154 = vpow2.f32 %v899_v63  ;;  %v957_v63 = vpack.c.bf16 %v2462_v49, %v2425_v51 }
 0x4cb   : > { %v909_v8 = vmul.f32 1.442695, %v895_v6  ;;  %v907_v15 = vmul.f32 1.442695, %v894_v7 }
 0x4cc   : > { %v888_v10 = vpop.xlane.xlu0 %887  ;;  %v2076_v11 = vpop.permute.xlu1 %2075 }
 0x4cd   : > { %v896_v12 = vsub.f32 %v862_v45, %v888_v10  ;;  %v2078_v13 = vunpack.i.h.bf16 %v2076_v11  ;;  %v2077_v14 = vunpack.i.l.bf16 %v2076_v11  ;;  %2156 = vpow2.f32 %v909_v8 }
 0x4ce   : > { %2158 = vpow2.f32 %v905_v9 }
 0x4cf   : > { %v911_v16 = vmul.f32 1.442695, %v896_v12  ;;  %v960_v17 = vpack.c.bf16 %v2078_v13, %v2077_v14  ;;  %v2251_v13 = vmov 0.0   ;;  %v2116_v14 = vld [vmem:[%s2367_s21 + $0x18] sm:$0xff]  }
 0x4d0   : > { %1968 = vmatprep.subr.bf16.mxu1 %v2251_v13  ;;  %1976 = vmatprep.mubr.msk.bf16.mxu1 %vm2253_vm5, %v2251_v13 }
 0x4d1   : > { %2160 = vpow2.f32 %v911_v16  ;;  %1940 = vmatprep.subr.bf16.mxu0 %v960_v17 }
 0x4d2   : > { %1941 = vmatpush3.bf16.msra.mxu0 %v960_v17  ;;  %v2470_v20 = vpop.eup %2148  ;;  %2162 = vpow2.f32 %v907_v15  ;;  %v2117_v15 = vld [vmem:[%s2367_s21 + $0x10] sm:$0xff]  }
 0x4d3   : > { %v919_v21 = vsel %vm594_vm3, %v2470_v20, 0.0  ;;  %v2151_v22 = vpop.eup %2150 }
 0x4d4   : > { %920 = vadd.xlane.f32.xlu1 %v919_v21  ;;  %v913_v26 = vsel %vm594_vm3, %v2151_v22, 0.0 }
 0x4d6   : > { %v2153_v23 = vpop.eup %2152 }
 0x4d7   : > { %v922_v24 = vsel %vm594_vm3, %v2153_v23, 0.0  ;;  %v2155_v25 = vpop.eup %2154 }
 0x4d8   : > { %923 = vadd.xlane.f32.xlu0 %v922_v24  ;;  %914 = vadd.xlane.f32.xlu1 %v913_v26  ;;  %v916_v29 = vsel %vm594_vm3, %v2155_v25, 0.0  ;;  %v2119_v24 = vld [vmem:[%s2367_s21] sm:$0xff]  }
 0x4da   : > { %v2476_v27 = vpop.eup %2156 }
 0x4db   : > { %v931_v30 = vsel %vm594_vm3, %v2476_v27, 0.0  ;;  %v2159_v31 = vpop.eup %2158 }
 0x4dc   : > { %917 = vadd.xlane.f32.xlu0 %v916_v29  ;;  %932 = vadd.xlane.f32.xlu1 %v931_v30  ;;  %v925_v35 = vsel %vm594_vm3, %v2159_v31, 0.0 }
 0x4de   : > { %v2161_v32 = vpop.eup %2160 }
 0x4df   : > { %v934_v33 = vsel %vm594_vm3, %v2161_v32, 0.0  ;;  %v2163_v34 = vpop.eup %2162 }
 0x4e0   : > { %935 = vadd.xlane.f32.xlu0 %v934_v33  ;;  %926 = vadd.xlane.f32.xlu1 %v925_v35  ;;  %v928_v36 = vsel %vm594_vm3, %v2163_v34, 0.0 }
 0x4e4   : > { %929 = vadd.xlane.f32.xlu0 %v928_v36 }
 0x4f1   : > { %2085 = vrot.lane.b32.xlu1 %v2466_v50, %s2247_s6 }
 0x4fa   : > { %2080 = vrot.lane.b32.xlu0 %v2466_v50, %s2249_s20 }
 0x55d   : > { %v921_v37 = vpop.xlane.xlu1 %920 }
 0x561   : > { %v924_v38 = vpop.xlane.xlu0 %923  ;;  %v915_v39 = vpop.xlane.xlu1 %914 }
 0x562   : > { %2164 = vrcp.f32 %v915_v39 }
 0x565   : > { %v918_v41 = vpop.xlane.xlu0 %917  ;;  %v933_v42 = vpop.xlane.xlu1 %932 }
 0x566   : > { %2166 = vrcp.f32 %v918_v41 }
 0x567   : > { %2168 = vrcp.f32 %v924_v38 }
 0x568   : > { %2170 = vrcp.f32 %v921_v37 }
 0x569   : > { %v936_v43 = vpop.xlane.xlu0 %935  ;;  %v927_v44 = vpop.xlane.xlu1 %926 }
 0x56d   : > { %v930_v45 = vpop.xlane.xlu0 %929  ;;  %v2086_v46 = vpop.permute.xlu1 %2085 }
 0x56e   : > { %2172 = vrcp.f32 %v930_v45  ;;  %v2088_v52 = vunpack.i.h.bf16 %v2086_v46  ;;  %v2087_v53 = vunpack.i.l.bf16 %v2086_v46 }
 0x56f   : > { %2174 = vrcp.f32 %v927_v44  ;;  %v2165_v47 = vpop.eup %2164 }
 0x570   : > { %2176 = vrcp.f32 %v936_v43  ;;  %v945_v57 = vmul.f32 %v2165_v47, %v2151_v22  ;;  %v958_v59 = vpack.c.bf16 %v2088_v52, %v2087_v53 }
 0x571   : > { %v2081_v48 = vpop.permute.xlu0 %2080  ;;  %2178 = vrcp.f32 %v933_v42 }
 0x572   : > { %v2083_v50 = vunpack.i.h.bf16 %v2081_v48  ;;  %v2082_v54 = vunpack.i.l.bf16 %v2081_v48 }
 0x573   : > { %v2167_v55 = vpop.eup %2166 }
 0x574   : > { %v959_v56 = vpack.c.bf16 %v2083_v50, %v2082_v54  ;;  %v946_v58 = vmul.f32 %v2167_v55, %v2155_v25  ;;  %v2169_v61 = vpop.eup %2168 }
 0x575   : > { %v2171_v62 = vpop.eup %2170  ;;  %v948_v4 = vmul.f32 %v2169_v61, %v2153_v23  ;;  %v2123_v61 = vld [vmem:[%s2372_s28] sm:$0xff]  }
 0x576   : > { %1942 = vmatprep.subr.bf16.mxu0 %v959_v56  ;;  %v953_v60 = vpack.c.bf16 %v946_v58, %v945_v57  ;;  %v947_v6 = vmul.f32 %v2171_v62, %v2470_v20  ;;  %v2118_v20 = vld [vmem:[%s2367_s21 + $0x8] sm:$0xff]  }
 0x577   : > { %1943 = vmatpush3.bf16.msra.mxu0 %v959_v56 }
 0x578   : > { %1944 = vmatprep.subr.bf16.mxu0 %v958_v59  ;;  %1948 = vmatprep.mubr.msk.bf16.mxu0 %vm594_vm3, %v953_v60  ;;  %v954_v8 = vpack.c.bf16 %v948_v4, %v947_v6  ;;  %v2121_v60 = vld [vmem:[%s2372_s28 + $0x10] sm:$0xff]   ;;  %v1167_v6 = vsub.s32 1, %v2418_v40 }
 0x57b   : > { %v2173_v2 = vpop.eup %2172  ;;  %1945 = vmatpush3.bf16.msra.mxu0 %v958_v59  ;;  %v2120_v59 = vld [vmem:[%s2372_s28 + $0x18] sm:$0xff]  }
 0x57c   : > { %v2175_v3 = vpop.eup %2174  ;;  %1946 = vmatprep.subr.bf16.mxu0 %v957_v63  ;;  %v950_v5 = vmul.f32 %v2173_v2, %v2163_v34  ;;  %1969 = vmatpush3.bf16.msra.mxu1 %v2120_v59 }
 0x57d   : > { %v949_v7 = vmul.f32 %v2175_v3, %v2159_v31  ;;  %v2177_v9 = vpop.eup %2176  ;;  %1970 = vmatprep.subr.bf16.mxu1 %v2251_v13 }
 0x57e   : > { %v2179_v11 = vpop.eup %2178  ;;  %v952_v51 = vmul.f32 %v2177_v9, %v2161_v32 }
 0x57f   : > { %1947 = vmatpush3.bf16.msra.mxu0 %v957_v63  ;;  %v955_v10 = vpack.c.bf16 %v950_v5, %v949_v7  ;;  %v951_v49 = vmul.f32 %v2179_v11, %v2476_v27 }
 0x580   : > { %1956 = vmatprep.subr.bf16.mxu0 %v2251_v13  ;;  %1971 = vmatpush3.bf16.msra.mxu1 %v2121_v60 }
 0x581   : > { %v956_v12 = vpack.c.bf16 %v952_v51, %v951_v49  ;;  %1972 = vmatprep.subr.bf16.mxu1 %v2251_v13 }
 0x582   : > { %1949 = vmatmul.mubr.msk.bf16.vlgmr.msra.gmra.mxu0 %vm594_vm3, %v954_v8  ;;  %v1168_v8 = vrot.slane %v2387_v0, %v1167_v6 }
 0x583   : > { %1952 = vmatprep.mubr.msk.bf16.mxu0 %vm594_vm3, %v955_v10  ;;  %1957 = vmatpush3.bf16.msra.mxu0 %v2116_v14  ;;  %v2124_v14 = vld [vmem:[%s2362_s14 + $0x30] ss:$8 sps:$4 sm:$0xff]  }
 0x584   : > { %1958 = vmatprep.subr.bf16.mxu0 %v2251_v13 }
 0x587   : > { %1959 = vmatpush3.bf16.msra.mxu0 %v2117_v15  ;;  %v2126_v15 = vld [vmem:[%s2362_s14 + $0x34] ss:$8 sps:$4 sm:$0xff]  }
 0x588   : > { %1960 = vmatprep.subr.bf16.mxu0 %v2251_v13 }
 0x58a   : > { %1953 = vmatmul.mubr.msk.bf16.gmra.mxu0 %vm594_vm3, %v956_v12 }
 0x58b   : > { %1961 = vmatpush3.bf16.msra.mxu0 %v2118_v20  ;;  %1964 = vmatprep.mubr.msk.bf16.mxu0 %vm2253_vm5, %v2251_v13  ;;  %v2132_v20 = vld [vmem:[%s2362_s14 + $0x14] ss:$8 sps:$4 sm:$0xff]  }
 0x58c   : > { %1962 = vmatprep.subr.bf16.mxu0 %v2251_v13 }
 0x58f   : > { %1963 = vmatpush3.bf16.msra.mxu0 %v2119_v24  ;;  %v2133_v24 = vld [vmem:[%s2362_s14] ss:$8 sps:$4 sm:$0xff]  }
 0x590   : > { %1332 = vmatprep.subr.bf16.mxu0 %v2126_v15 }
 0x642   : > { %v1950_v16 = vpop.f32.mrf.mxu0 }
 0x644   : > { %v1007_v17 = vpop.f32.mrf.mxu0 }
 0x646   : > { %v1951_v21 = vpop.f32.mrf.mxu0 }
 0x647   : > { %v2089_v22 = vpack.i.bf16 %v1951_v21, %v1950_v16  ;;  %v2129_v16 = vld [vmem:[%s2362_s14 + $0x24] ss:$8 sps:$4 sm:$0xff]   ;;  %v2130_v21 = vld [vmem:[%s2362_s14 + $0x10] ss:$8 sps:$4 sm:$0xff]  }
 0x648   : > { %v1010_v23 = vpop.f32.mrf.mxu0 }
 0x649   : > { %2090 = vrot.lane.b32.xlu1 %v2089_v22, %s2252_s25  ;;  %v1182_v22 = vsub.s32 2, %v2418_v40 }
 0x64a   : > { %v1954_v25 = vpop.f32.mrf.mxu0 }
 0x64c   : > { %v1023_v26 = vpop.f32.mrf.mxu0 }
 0x64e   : > { %v1955_v27 = vpop.f32.mrf.mxu0 }
 0x64f   : > { %v2099_v29 = vpack.i.bf16 %v1955_v27, %v1954_v25  ;;  %v1183_v25 = vrot.slane %v2387_v0, %v1182_v22 }
 0x650   : > { %v1026_v30 = vpop.f32.mrf.mxu0 }
 0x651   : > { %v2094_v31 = vpack.i.bf16 %v1026_v30, %v1023_v26  ;;  %2100 = vrot.lane.b32.xlu1 %v2099_v29, %s2254_s26 }
 0x653   : > { %2095 = vrot.lane.b32.xlu0 %v2094_v31, %s2255_s29 }
 0x6bb   : > { %v2091_v32 = vpop.permute.xlu1 %2090 }
 0x6bc   : > { %v2093_v33 = vunpack.i.h.bf16 %v2091_v32  ;;  %v2092_v34 = vunpack.i.l.bf16 %v2091_v32 }
 0x6be   : > { %v1062_v39 = vsel %vm775_vm4, %v1007_v17, %v2092_v34  ;;  %v1063_v41 = vsel %vm775_vm4, %v1010_v23, %v2093_v33  ;;  %v2127_v17 = vld [vmem:[%s2362_s14 + $0x20] ss:$8 sps:$4 sm:$0xff]   ;;  %v2135_v23 = vld [vmem:[%s2362_s14 + $0x4] ss:$8 sps:$4 sm:$0xff]  }
 0x6c3   : > { %v2101_v35 = vpop.permute.xlu1 %2100 }
 0x6c4   : > { %v2103_v42 = vunpack.i.h.bf16 %v2101_v35  ;;  %v2102_v43 = vunpack.i.l.bf16 %v2101_v35 }
 0x6c5   : > { %v2096_v36 = vpop.permute.xlu0 %2095 }
 0x6c6   : > { %v2098_v37 = vunpack.i.h.bf16 %v2096_v36  ;;  %v2097_v38 = vunpack.i.l.bf16 %v2096_v36 }
 0x6c8   : > { %v1066_v44 = vsel %vm1064_vm6, %v1063_v41, %v2098_v37  ;;  %v1065_v45 = vsel %vm1064_vm6, %v1062_v39, %v2097_v38  ;;  %v2136_v41 = vld [vmem:[%s2377_s11 + $0x38] sm:$0xff]  }
 0x6c9   : > { %v1069_v46 = vsel %vm1067_vm7, %v1066_v44, %v2103_v42  ;;  %v1068_v47 = vsel %vm1067_vm7, %v1065_v45, %v2102_v43  ;;  %v2137_v42 = vld [vmem:[%s2377_s11 + $0x30] sm:$0xff]   ;;  %v2138_v43 = vld [vmem:[%s2377_s11 + $0x28] sm:$0xff]   ;;  %v2139_v44 = vld [vmem:[%s2377_s11 + $0x20] sm:$0xff]  }
 0x6ca   : > { %v1078_v48 = vpack.c.bf16 %v1069_v46, %v1068_v47  ;;  %v2140_v45 = vld [vmem:[%s2377_s11 + $0x18] sm:$0xff]   ;;  %v2141_v46 = vld [vmem:[%s2377_s11 + $0x10] sm:$0xff]   ;;  %v2142_v47 = vld [vmem:[%s2377_s11 + $0x8] sm:$0xff]  }
 0x6cc   : > { %1965 = vmatmul.mubr.msk.bf16.vlgmr.msra.gmra.mxu0 %vm594_vm3, %v1078_v48  ;;  %v2143_v48 = vld [vmem:[%s2377_s11] sm:$0xff]  }
 0x6cd   : > { %1356 = vmatprep.mubr.bf16.mxu0 %v2246_v28  ;;  %1333 = vmatpush1.bf16.msra.mxu0 %v2124_v14 }
 0x6ce   : > { %1334 = vmatprep.subr.bf16.mxu0 %v2129_v16 }
 0x6d1   : > { %1335 = vmatpush1.bf16.msra.mxu0 %v2127_v17 }
 0x6d2   : > { %1336 = vmatprep.subr.bf16.mxu0 %v2132_v20  ;;  %v1497_v20 = vsub.s32 4, %v2418_v40 }
 0x6d5   : > { %1337 = vmatpush1.bf16.msra.mxu0 %v2130_v21  ;;  %v1498_v21 = vrot.slane %v2387_v0, %v1497_v20 }
 0x6d6   : > { %1338 = vmatprep.subr.bf16.mxu0 %v2135_v23 }
 0x6d9   : > { %1339 = vmatpush1.bf16.msra.mxu0 %v2133_v24 }
 0x78c   : > { %v1140_v52 = vpop.f32.mrf.mxu0 }
 0x78d   : > { %v2514_v53 = vadd.f32 %v1140_v52, %v2399_v18  ;;  %v1275_v52 = vsub.s32 3, %v2418_v40 }
 0x78e   : > { %v1966_v50 = vpop.f32.mrf.mxu0 }
 0x78f   : > { %v1149_v54 = vmul.f32 %v2514_v53, %v2514_v53  ;;  %v1280_v50 = vrot.slane %v2389_v1, %v1275_v52 }
 0x790   : > { %v1143_v55 = vpop.f32.mrf.mxu0 }
 0x791   : > { %v2519_v56 = vadd.f32 %v1143_v55, %v2401_v19  ;;  %v1151_v57 = vsel %vm594_vm3, %v1149_v54, 0.0  ;;  %v2122_v19 = vld [vmem:[%s2372_s28 + $0x8] sm:$0xff]  }
 0x792   : > { %1152 = vadd.xlane.f32.xlu0 %v1151_v57  ;;  %v1967_v58 = vpop.f32.mrf.mxu0  ;;  %1973 = vmatpush3.bf16.msra.mxu1 %v2122_v19 }
 0x793   : > { %v1150_v28 = vmul.f32 %v2519_v56, %v2519_v56  ;;  %1974 = vmatprep.subr.bf16.mxu1 %v2251_v13 }
 0x795   : > { %v1154_v18 = vsel %vm594_vm3, %v1150_v28, 0.0 }
 0x796   : > { %1155 = vadd.xlane.f32.xlu1 %v1154_v18  ;;  %1975 = vmatpush3.bf16.msra.mxu1 %v2123_v61 }
 0x797   : > { %1980 = vmatprep.subr.bf16.mxu1 %v2251_v13 }
 0x81b   : > { %v1153_v62 = vpop.xlane.xlu0 %1152 }
 0x81c   : > { %v1157_v63 = vmul.f32 0.015625, %v1153_v62 }
 0x81e   : > { %v1159_v2 = vadd.f32 1e-06, %v1157_v63 }
 0x81f   : > { %v1156_v3 = vpop.xlane.xlu1 %1155 }
 0x820   : > { %2180 = vrsqrt.f32 %v1159_v2  ;;  %v1158_v4 = vmul.f32 0.015625, %v1156_v3 }
 0x822   : > { %v1160_v5 = vadd.f32 1e-06, %v1158_v4 }
 0x824   : > { %2182 = vrsqrt.f32 %v1160_v5 }
 0x82d   : > { %v2181_v7 = vpop.eup %2180 }
 0x82e   : > { %v1163_v9 = vmul.f32 %v2181_v7, %v2514_v53  ;;  %v1276_v7 = vrot.slane %v2387_v0, %v1275_v52 }
 0x830   : > { %v1169_v51 = vmul.f32 %v1168_v8, %v1163_v9 }
 0x831   : > { %v2183_v10 = vpop.eup %2182 }
 0x832   : > { %v1164_v11 = vmul.f32 %v2183_v10, %v2519_v56 }
 0x834   : > { %v1170_v49 = vmul.f32 %v1168_v8, %v1164_v11 }
 0x836   : > { %v1179_v12 = vpack.c.bf16 %v1170_v49, %v1169_v51 }
 0x838   : > { %1977 = vmatmul.mubr.msk.bf16.vlgmr.msra.gmra.mxu1 %vm594_vm3, %v1179_v12 }
 0x839   : > { %1996 = vmatprep.mubr.msk.bf16.mxu1 %vm2253_vm5, %v2251_v13  ;;  %1981 = vmatpush3.bf16.msra.mxu1 %v2136_v41 }
 0x83a   : > { %1982 = vmatprep.subr.bf16.mxu1 %v2251_v13 }
 0x83d   : > { %1983 = vmatpush3.bf16.msra.mxu1 %v2137_v42 }
 0x83e   : > { %1984 = vmatprep.subr.bf16.mxu1 %v2251_v13 }
 0x841   : > { %1985 = vmatpush3.bf16.msra.mxu1 %v2138_v43 }
 0x842   : > { %1986 = vmatprep.subr.bf16.mxu1 %v2251_v13 }
 0x845   : > { %1987 = vmatpush3.bf16.msra.mxu1 %v2139_v44 }
 0x846   : > { %1988 = vmatprep.subr.bf16.mxu1 %v2251_v13 }
 0x849   : > { %1989 = vmatpush3.bf16.msra.mxu1 %v2140_v45 }
 0x84a   : > { %1990 = vmatprep.subr.bf16.mxu1 %v2251_v13 }
 0x84d   : > { %1991 = vmatpush3.bf16.msra.mxu1 %v2141_v46 }
 0x84e   : > { %1992 = vmatprep.subr.bf16.mxu1 %v2251_v13 }
 0x851   : > { %1993 = vmatpush3.bf16.msra.mxu1 %v2142_v47 }
 0x852   : > { %1994 = vmatprep.subr.bf16.mxu1 %v2251_v13 }
 0x855   : > { %1995 = vmatpush3.bf16.msra.mxu1 %v2143_v48 }
 0x8f8   : > { %v1245_v26 = vpop.f32.mrf.mxu1 }
 0x8f9   : > { %v1246_v27 = vadd.f32 %v1245_v26, %v1183_v25 }
 0x8fa   : > { %v1978_v29 = vpop.f32.mrf.mxu1 }
 0x8fb   : > { %1256 = vrot.lane.b32.xlu0 %v1246_v27, %s2250_s22  ;;  %v1252_v34 = vmul.f32 %v1246_v27, %v1169_v51 }
 0x8fc   : > { %v1248_v30 = vpop.f32.mrf.mxu1 }
 0x8fd   : > { %v1249_v31 = vadd.f32 %v1248_v30, %v1183_v25 }
 0x8fe   : > { %v1979_v32 = vpop.f32.mrf.mxu1 }
 0x8ff   : > { %1258 = vrot.lane.b32.xlu1 %v1249_v31, %s2250_s22  ;;  %v1253_v35 = vmul.f32 %v1249_v31, %v1170_v49 }
 0x96d   : > { %v1257_v33 = vpop.permute.xlu0 %1256 }
 0x96e   : > { %v1262_v37 = vadd.f32 %v1257_v33, %v1252_v34 }
 0x971   : > { %v1259_v36 = vpop.permute.xlu1 %1258 }
 0x972   : > { %v1263_v38 = vadd.f32 %v1259_v36, %v1253_v35 }
 0x974   : > { %v1272_v39 = vpack.c.bf16 %v1263_v38, %v1262_v37 }
 0x976   : > { %1848 = vmatmul.mubr.msk.bf16.vlgmr.msra.gmra.mxu0 %vm594_vm3, %v1272_v39 }
 0xa36   : > { %v1358_v54 = vpop.f32.mrf.mxu0 }
 0xa37   : > { %v1359_v49 = vadd.f32 %v1358_v54, %v1276_v7 }
 0xa38   : > { %v1360_v55 = vpop.f32.mrf.mxu0 }
 0xa39   : > { %v1361_v57 = vadd.f32 %v1360_v55, %v1280_v50 }
 0xa3a   : > { %v1362_v58 = vpop.f32.mrf.mxu0 }
 0xa3b   : > { %v1369_v28 = vmul.f32 0.044715, %v1361_v57  ;;  %v1367_v8 = vmul.f32 0.5, %v1361_v57  ;;  %v1363_v12 = vadd.f32 %v1362_v58, %v1276_v7 }
 0xa3c   : > { %v1364_v18 = vpop.f32.mrf.mxu0 }
 0xa3d   : > { %v1371_v59 = vmul.f32 %v1369_v28, %v1361_v57  ;;  %v1365_v60 = vadd.f32 %v1364_v18, %v1280_v50 }
 0xa3f   : > { %v1373_v19 = vmul.f32 %v1371_v59, %v1361_v57  ;;  %v1370_v61 = vmul.f32 0.044715, %v1365_v60  ;;  %v1368_v10 = vmul.f32 0.5, %v1365_v60 }
 0xa41   : > { %v1375_v62 = vadd.f32 %v1373_v19, %v1361_v57  ;;  %v1372_v63 = vmul.f32 %v1370_v61, %v1365_v60 }
 0xa43   : > { %v1377_v2 = vmul.f32 0.7978846, %v1375_v62  ;;  %v1374_v3 = vmul.f32 %v1372_v63, %v1365_v60 }
 0xa45   : > { %2184 = vtanh.f32 %v1377_v2  ;;  %v1376_v13 = vadd.f32 %v1374_v3, %v1365_v60 }
 0xa47   : > { %v1378_v4 = vmul.f32 0.7978846, %v1376_v13 }
 0xa49   : > { %2186 = vtanh.f32 %v1378_v4 }
 0xa52   : > { %v2185_v5 = vpop.eup %2184 }
 0xa53   : > { %v1381_v6 = vadd.f32 1.0, %v2185_v5 }
 0xa55   : > { %v1383_v51 = vmul.f32 %v1381_v6, %v1367_v8 }
 0xa56   : > { %v2187_v9 = vpop.eup %2186 }
 0xa57   : > { %v1382_v11 = vadd.f32 1.0, %v2187_v9  ;;  %v1385_v15 = vmul.f32 %v1383_v51, %v1359_v49 }
 0xa59   : > { %v1384_v14 = vmul.f32 %v1382_v11, %v1368_v10 }
 0xa5b   : > { %v1386_v16 = vmul.f32 %v1384_v14, %v1363_v12 }
 0xa5d   : > { %v1403_v17 = vpack.c.bf16 %v1386_v16, %v1385_v15 }
 0xa5f   : > { %1997 = vmatmul.mubr.bf16.vlgmr.msra.gmra.mxu1 %v1403_v17 }
 0xb1f   : > { %v1486_v22 = vpop.f32.mrf.mxu1 }
 0xb20   : > { %v1493_v23 = vadd.f32 %v1486_v22, %v2514_v53 }
 0xb21   : > { %v1998_v24 = vpop.f32.mrf.mxu1 }
 0xb22   : > { %v1499_v25 = vadd.f32 %v1498_v21, %v1493_v23 }
 0xb23   : > { %v1489_v26 = vpop.f32.mrf.mxu1 }
 0xb24   : > { %1501 = vst.msk [vmem:[#allocation2] sm:$0xff] %vm594_vm3, %v1499_v25  ;;  %v1494_v27 = vadd.f32 %v1489_v26, %v2519_v56  ;;  %1506 = sbr.rel (%p1857_p8) target bundleno = 3228 (0xc9c), region = 68 }
 0xb25   : > { %v1999_v29 = vpop.f32.mrf.mxu1 }
 0xb26   : > { %v1500_v30 = vadd.f32 %v1498_v21, %v1494_v27 }
 0xb28   : > { %1502 = vst.msk [vmem:[#allocation2 + $0x8] sm:$0xff] %vm594_vm3, %v1500_v30 }
 0xb29   : > { %v1507_v31 = vmul.f32 %v1499_v25, %v1499_v25  ;;  %v1508_v32 = vmul.f32 %v1500_v30, %v1500_v30  ;;  %v2188_v34 = vld [vmem:[%s2637_s8 + $0x34] ss:$8 sps:$4 sm:$0xff]   ;;  %v2190_v56 = vld [vmem:[%s2637_s8 + $0x30] ss:$8 sps:$4 sm:$0xff]   ;;  %v2191_v35 = vld [vmem:[%s2637_s8 + $0x24] ss:$8 sps:$4 sm:$0xff]  }
 0xb2a   : > { %1597 = vmatprep.subr.bf16.mxu0 %v2188_v34  ;;  %v2193_v36 = vld [vmem:[%s2637_s8 + $0x20] ss:$8 sps:$4 sm:$0xff]   ;;  %v2194_v37 = vld [vmem:[%s2637_s8 + $0x14] ss:$8 sps:$4 sm:$0xff]   ;;  %v2196_v38 = vld [vmem:[%s2637_s8 + $0x10] ss:$8 sps:$4 sm:$0xff]  }
 0xb2b   : > { %v1509_v33 = vsel %vm594_vm3, %v1507_v31, 0.0  ;;  %v1512_v53 = vsel %vm594_vm3, %v1508_v32, 0.0  ;;  %1598 = vmatpush1.bf16.msra.mxu0 %v2190_v56  ;;  %v2197_v39 = vld [vmem:[%s2637_s8 + $0x4] ss:$8 sps:$4 sm:$0xff]   ;;  %v2199_v41 = vld [vmem:[%s2637_s8] ss:$8 sps:$4 sm:$0xff]  }
 0xb2c   : > { %1510 = vadd.xlane.f32.xlu0 %v1509_v33  ;;  %1599 = vmatprep.subr.bf16.mxu0 %v2191_v35  ;;  %v2256_v42 = vmov 0   ;;  %v1525_v52 = vsub.s32 6, %v2418_v40  ;;  %v1540_v60 = vsub.s32 7, %v2418_v40 }
 0xb2d   : > { %1621 = vmatprep.mubr.bf16.mxu0 %v2256_v42 }
 0xb2e   : > { %v1526_v55 = vrot.slane %v2387_v0, %v1525_v52  ;;  %v1541_v19 = vrot.slane %v2387_v0, %v1540_v60  ;;  %v1545_v61 = vrot.slane %v2389_v1, %v1540_v60 }
 0xb2f   : > { %1600 = vmatpush1.bf16.msra.mxu0 %v2193_v36 }
 0xb30   : > { %1513 = vadd.xlane.f32.xlu0 %v1512_v53  ;;  %1601 = vmatprep.subr.bf16.mxu0 %v2194_v37 }
 0xb33   : > { %1602 = vmatpush1.bf16.msra.mxu0 %v2196_v38 }
 0xb34   : > { %1603 = vmatprep.subr.bf16.mxu0 %v2197_v39 }
 0xb37   : > { %1604 = vmatpush1.bf16.msra.mxu0 %v2199_v41 }
 0xbb5   : > { %v1511_v43 = vpop.xlane.xlu0 %1510 }
 0xbb6   : > { %v1515_v44 = vmul.f32 0.015625, %v1511_v43 }
 0xbb8   : > { %v1517_v45 = vadd.f32 1e-06, %v1515_v44 }
 0xbb9   : > { %v1514_v46 = vpop.xlane.xlu0 %1513 }
 0xbba   : > { %2200 = vrsqrt.f32 %v1517_v45  ;;  %v1516_v47 = vmul.f32 0.015625, %v1514_v46 }
 0xbbc   : > { %v1518_v48 = vadd.f32 1e-06, %v1516_v47 }
 0xbbe   : > { %2202 = vrsqrt.f32 %v1518_v48 }
 0xbc7   : > { %v2201_v50 = vpop.eup %2200 }
 0xbc8   : > { %v1521_v54 = vmul.f32 %v2201_v50, %v1499_v25 }
 0xbca   : > { %v1527_v28 = vmul.f32 %v1526_v55, %v1521_v54 }
 0xbcb   : > { %v2203_v57 = vpop.eup %2202 }
 0xbcc   : > { %v1522_v58 = vmul.f32 %v2203_v57, %v1500_v30 }
 0xbce   : > { %v1528_v18 = vmul.f32 %v1526_v55, %v1522_v58 }
 0xbd0   : > { %v1537_v59 = vpack.c.bf16 %v1528_v18, %v1527_v28 }
 0xbd2   : > { %1866 = vmatmul.mubr.msk.bf16.vlgmr.msra.gmra.mxu0 %vm594_vm3, %v1537_v59 }
 0xc92   : > { %v1623_v62 = vpop.f32.mrf.mxu0 }
 0xc93   : > { %v1624_v63 = vadd.f32 %v1623_v62, %v1541_v19 }
 0xc94   : > { %v1625_v2 = vpop.f32.mrf.mxu0 }
 0xc95   : > { %1632 = vst [vmem:[%s2385_s15] sm:$0xff] %v1624_v63  ;;  %v1626_v3 = vadd.f32 %v1625_v2, %v1545_v61 }
 0xc96   : > { %v1627_v13 = vpop.f32.mrf.mxu0 }
 0xc97   : > { %1633 = vst [vmem:[%s2385_s15 + $0x8] sm:$0xff] %v1626_v3  ;;  %v1628_v4 = vadd.f32 %v1627_v13, %v1541_v19 }
 0xc98   : > { %v1629_v5 = vpop.f32.mrf.mxu0 }
 0xc99   : > { %1634 = vst [vmem:[%s2385_s15 + $0x10] sm:$0xff] %v1628_v4  ;;  %v1630_v6 = vadd.f32 %v1629_v5, %v1545_v61 }
 0xc9b   : > { %1635 = vst [vmem:[%s2385_s15 + $0x18] sm:$0xff] %v1630_v6 }
 0xc9c PF: > { %s2656_s6 = sld [smem:[#allocation5_spill]] }
 0xc9d   : > { %s2657_s13 = sld [smem:[#allocation3_spill]] }
 0xc9e   : > { %s2658_s14 = sld [smem:[#allocation4_spill]] }
 0xc9f   : > { %s2659_s15 = sld [smem:[#allocation6_spill]] }
 0xca0   : > { %s2660_s16 = sld [smem:[#allocation7_spill]] }
 0xca2   : > { %s20_s17 = sadd.s32 1, %s2656_s6  }
 0xca3   : > { %p17_p9 = scmp.ge.s32.totalorder %s20_s17, 6  }
 0xca5   :  { %19 = sbr.rel (!%p17_p9) target bundleno = 5 (0x5), region = 119 }

</bundles_post_ra>
